<compile_context>
chip_gen: v7x
topology: tpu7x:2x2x1
jax: 0.10.0
libtpu: 0.0.40
codegen_flags: <defaults>
</compile_context>

<pallas_src>
import functools
import math

import jax
import jax.numpy as jnp
import numpy as np
from jax.experimental import pallas as pl
from jax.experimental.pallas import tpu as pltpu


def _downblock_kernel(xs_ref, w1_ref, w2_ref,        # inputs
                      out_ref,                        # output
                      pad2_ref,                       # VMEM scratch
                      *, B, Ho, Wo, nFeat, Cout, pad_rows):
    N2 = Ho * Wo
    slab = N2 + 2 * pad_rows

    # ------------- conv1: 3x3 / stride 2 / pad 1 (bias-free) + ReLU -------------
    # im2col patches were built in the wrapper -> single matmul, M = B*N2.
    h1 = jnp.maximum(
        jnp.dot(xs_ref[...], w1_ref[...], preferred_element_type=jnp.float32),
        0.0)                                                   # (B*N2, nFeat)

    # ------------- conv2: 3x3 / stride 1 / pad 1 (bias-free), copy-free -------------
    # Vertical zero-padding via per-image slabs; only pad rows are zeroed.
    zpad = jnp.zeros((pad_rows, nFeat), jnp.float32)
    for b in range(B):
        base = b * slab
        pad2_ref[base:base + pad_rows, :] = zpad
        pad2_ref[base + pad_rows + N2:base + slab, :] = zpad
        pad2_ref[base + pad_rows:base + pad_rows + N2, :] = (
            h1[b * N2:(b + 1) * N2, :])

    # Hoisted full-shape horizontal-border masks (built once, reused by all
    # dx = +-1 taps of both images).
    ox = jax.lax.broadcasted_iota(jnp.int32, (N2, nFeat), 0) % Wo
    mask_l = ox > 0              # dx = -1 read stays inside the row
    mask_r = ox < (Wo - 1)       # dx = +1 read stays inside the row

    # 9 accumulating matmuls per image fed directly from shifted slab views.
    for b in range(B):
        body = b * slab + pad_rows
        acc = jnp.zeros((N2, Cout), jnp.float32)
        for kh in range(3):
            for kw in range(3):
                dy, dx = kh - 1, kw - 1
                s = dy * Wo + dx
                win = pad2_ref[body + s:body + s + N2, :]      # (N2, nFeat)
                if dx == -1:
                    win = jnp.where(mask_l, win, 0.0)
                elif dx == 1:
                    win = jnp.where(mask_r, win, 0.0)
                acc = acc + jnp.dot(win, w2_ref[kh * 3 + kw],
                                    preferred_element_type=jnp.float32)
        out_ref[b * N2:(b + 1) * N2, :] = acc.astype(out_ref.dtype)


def downblock_pallas(x, w1, w2):
    """DownBlock (scale=2) forward.

    x : (B, Cin, H, W) float32, H and W even.
    w1: (nFeat, Cin, 3, 3)  torch OIHW layout (stride-2 conv, no bias).
    w2: (Cout, nFeat, 3, 3) torch OIHW layout (stride-1 conv, no bias).
    Returns (B, Cout, H//2, W//2).
    """
    B, Cin, H, W = x.shape
    nFeat = w1.shape[0]
    Cout = w2.shape[0]
    assert H % 2 == 0 and W % 2 == 0
    Ho, Wo = H // 2, W // 2
    N2 = Ho * Wo
    M = B * N2
    pad_rows = ((Wo + 1 + 7) // 8) * 8       # >= Wo+1 and sublane aligned
    slab = N2 + 2 * pad_rows

    # ---- layout plumbing in the wrapper (pure data movement, no compute) ----
    # conv1 im2col: xs[b*N2 + oy*Wo + ox, (kh*3+kw)*Cin + c]
    #             = xpad[b, 2*oy + kh, 2*ox + kw, c]
    xh = jnp.transpose(x, (0, 2, 3, 1))                      # NHWC
    xp = jnp.pad(xh, ((0, 0), (1, 1), (1, 1), (0, 0)))
    taps = [xp[:, kh:kh + H:2, kw:kw + W:2, :]
            for kh in range(3) for kw in range(3)]
    xs = jnp.concatenate(taps, axis=-1).reshape(M, 9 * Cin)

    # weights -> im2col layouts
    w1m = jnp.transpose(w1, (2, 3, 1, 0)).reshape(9 * Cin, nFeat)   # (9*Cin, nFeat)
    w2m = jnp.transpose(w2, (2, 3, 1, 0)).reshape(9, nFeat, Cout)   # (9, nFeat, Cout)

    kern = functools.partial(_downblock_kernel, B=B, Ho=Ho, Wo=Wo,
                             nFeat=nFeat, Cout=Cout, pad_rows=pad_rows)

    out = pl.pallas_call(
        kern,
        out_shape=jax.ShapeDtypeStruct((M, Cout), x.dtype),
        grid_spec=pltpu.PrefetchScalarGridSpec(
            num_scalar_prefetch=0,
            grid=(1,),                     # batch folded into M (single step)
            in_specs=[
                pl.BlockSpec((M, 9 * Cin), lambda i: (0, 0)),
                pl.BlockSpec((9 * Cin, nFeat), lambda i: (0, 0)),
                pl.BlockSpec((9, nFeat, Cout), lambda i: (0, 0, 0)),
            ],
            out_specs=pl.BlockSpec((M, Cout), lambda i: (0, 0)),
            scratch_shapes=[
                pltpu.VMEM((B * slab, nFeat), jnp.float32),
            ],
        ),
        compiler_params=pltpu.CompilerParams(
            dimension_semantics=("arbitrary",)),
    )(xs, w1m, w2m)

    # (B*Ho*Wo, Cout) -> NCHW
    return jnp.transpose(out.reshape(B, Ho, Wo, Cout), (0, 3, 1, 2))


# ----------------------- pure-JAX reference (for verification) -----------------------
def ref_downblock(x, w1, w2):
    h = jax.lax.conv_general_dilated(
        x, w1, window_strides=(2, 2), padding=((1, 1), (1, 1)),
        dimension_numbers=("NCHW", "OIHW", "NCHW"),
        precision=jax.lax.Precision.HIGHEST)
    h = jax.nn.relu(h)
    return jax.lax.conv_general_dilated(
        h, w2, window_strides=(1, 1), padding=((1, 1), (1, 1)),
        dimension_numbers=("NCHW", "OIHW", "NCHW"),
        precision=jax.lax.Precision.HIGHEST)


if __name__ == "__main__":
    # DownBlock(scale=2) defaults: nFeat=20, in_channels=3, out_channels=3
    B, in_ch, H, W = 2, 3, 16, 16
    nFeat, out_ch = 20, 3

    key = jax.random.PRNGKey(0)
    k1, k2, k3 = jax.random.split(key, 3)
    x = jax.random.normal(k1, (B, in_ch, H, W), jnp.float32)
    w1 = jax.random.normal(k2, (nFeat, in_ch, 3, 3), jnp.float32) / math.sqrt(in_ch * 9)
    w2 = jax.random.normal(k3, (out_ch, nFeat, 3, 3), jnp.float32) / math.sqrt(nFeat * 9)

    out = downblock_pallas(x, w1, w2)
    out = jax.block_until_ready(out)

    ref = ref_downblock(x, w1, w2)
    ref = jax.block_until_ready(ref)

    assert out.shape == (B, out_ch, H // 2, W // 2)
    err = float(jnp.max(jnp.abs(out - ref)))
    if not np.allclose(np.asarray(out), np.asarray(ref), rtol=2e-3, atol=2e-3):
        raise AssertionError(f"mismatch vs reference, max abs err = {err}")

    print("KERNEL_OK")
</pallas_src>

<mosaic_0001>
module attributes {stable_mosaic.version = 11 : i64} {
  func.func @_downblock_kernel(%arg0: i32, %arg1: memref<128x27xf32, #tpu.memory_space<vmem>>, %arg2: memref<27x20xf32, #tpu.memory_space<vmem>>, %arg3: memref<9x20x3xf32, #tpu.memory_space<vmem>>, %arg4: memref<128x3xf32, #tpu.memory_space<vmem>>, %arg5: memref<192x20xf32, #tpu.memory_space<vmem>>) attributes {dimension_semantics = [#tpu.dimension_semantics<arbitrary>], iteration_bounds = array<i64: 1>, scalar_prefetch = 0 : i64, scratch_operands = 1 : i64, tpu.core_type = #tpu.core_type<tc>, window_params = [{pipeline_mode = #tpu.pipeline_mode<synchronous>, transform_indices = @transform_0, window_bounds = array<i64: 128, 27>}, {pipeline_mode = #tpu.pipeline_mode<synchronous>, transform_indices = @transform_1, window_bounds = array<i64: 27, 20>}, {pipeline_mode = #tpu.pipeline_mode<synchronous>, transform_indices = @transform_2, window_bounds = array<i64: 9, 20, 3>}, {pipeline_mode = #tpu.pipeline_mode<synchronous>, transform_indices = @transform_3, window_bounds = array<i64: 128, 3>}]} {
    %c0 = arith.constant 0 : index
    %c0_0 = arith.constant 0 : index
    %0 = vector.load %arg1[%c0, %c0_0] : memref<128x27xf32, #tpu.memory_space<vmem>>, vector<128x27xf32>
    %c0_1 = arith.constant 0 : index
    %c0_2 = arith.constant 0 : index
    %1 = vector.load %arg2[%c0_1, %c0_2] : memref<27x20xf32, #tpu.memory_space<vmem>>, vector<27x20xf32>
    %cst = arith.constant dense<0.000000e+00> : vector<128x20xf32>
    %2 = tpu.matmul %0, %1, %cst {dimension_numbers = #tpu.dot_dimension_numbers<[1], [0], [0], [1], [0, 0, 1, 1], [], []>} : vector<128x27xf32>, vector<27x20xf32>, vector<128x20xf32> -> vector<128x20xf32>
    %cst_3 = arith.constant 0.000000e+00 : f32
    %3 = vector.broadcast %cst_3 : f32 to vector<128x20xf32>
    %4 = arith.maximumf %2, %3 : vector<128x20xf32>
    %cst_4 = arith.constant 0.000000e+00 : f32
    %5 = vector.broadcast %cst_4 : f32 to vector<16x20xf32>
    %c0_5 = arith.constant 0 : index
    %c0_6 = arith.constant 0 : index
    %6 = vector.load %arg5[%c0_5, %c0_6] : memref<192x20xf32, #tpu.memory_space<vmem>>, vector<16x20xf32>
    tpu.vector_store %arg5[%c0_5, %c0_6], %5 {strides = array<i32>} : memref<192x20xf32, #tpu.memory_space<vmem>>, vector<16x20xf32>,
    %c80 = arith.constant 80 : index
    %c0_7 = arith.constant 0 : index
    %7 = vector.load %arg5[%c80, %c0_7] : memref<192x20xf32, #tpu.memory_space<vmem>>, vector<16x20xf32>
    tpu.vector_store %arg5[%c80, %c0_7], %5 {strides = array<i32>} : memref<192x20xf32, #tpu.memory_space<vmem>>, vector<16x20xf32>,
    %8 = vector.extract_strided_slice %4 {offsets = [0, 0], sizes = [64, 20], strides = [1, 1]} : vector<128x20xf32> to vector<64x20xf32>
    %c16 = arith.constant 16 : index
    %c0_8 = arith.constant 0 : index
    %9 = vector.load %arg5[%c16, %c0_8] : memref<192x20xf32, #tpu.memory_space<vmem>>, vector<64x20xf32>
    tpu.vector_store %arg5[%c16, %c0_8], %8 {strides = array<i32>} : memref<192x20xf32, #tpu.memory_space<vmem>>, vector<64x20xf32>,
    %c96 = arith.constant 96 : index
    %c0_9 = arith.constant 0 : index
    %10 = vector.load %arg5[%c96, %c0_9] : memref<192x20xf32, #tpu.memory_space<vmem>>, vector<16x20xf32>
    tpu.vector_store %arg5[%c96, %c0_9], %5 {strides = array<i32>} : memref<192x20xf32, #tpu.memory_space<vmem>>, vector<16x20xf32>,
    %c176 = arith.constant 176 : index
    %c0_10 = arith.constant 0 : index
    %11 = vector.load %arg5[%c176, %c0_10] : memref<192x20xf32, #tpu.memory_space<vmem>>, vector<16x20xf32>
    tpu.vector_store %arg5[%c176, %c0_10], %5 {strides = array<i32>} : memref<192x20xf32, #tpu.memory_space<vmem>>, vector<16x20xf32>,
    %12 = vector.extract_strided_slice %4 {offsets = [64, 0], sizes = [64, 20], strides = [1, 1]} : vector<128x20xf32> to vector<64x20xf32>
    %c112 = arith.constant 112 : index
    %c0_11 = arith.constant 0 : index
    %13 = vector.load %arg5[%c112, %c0_11] : memref<192x20xf32, #tpu.memory_space<vmem>>, vector<64x20xf32>
    tpu.vector_store %arg5[%c112, %c0_11], %12 {strides = array<i32>} : memref<192x20xf32, #tpu.memory_space<vmem>>, vector<64x20xf32>,
    %14 = tpu.iota {dimensions = array<i32: 0>} : vector<64x20xi32>
    %c8_i32 = arith.constant 8 : i32
    %c0_i32 = arith.constant 0 : i32
    %15 = arith.cmpi eq, %c8_i32, %c0_i32 : i32
    %c1_i32 = arith.constant 1 : i32
    %16 = arith.select %15, %c1_i32, %c8_i32 : i32
    %17 = vector.broadcast %16 : i32 to vector<64x20xi32>
    %18 = arith.remsi %14, %17 : vector<64x20xi32>
    %c0_i32_12 = arith.constant 0 : i32
    %19 = vector.broadcast %c0_i32_12 : i32 to vector<64x20xi32>
    %20 = arith.cmpi ne, %18, %19 : vector<64x20xi32>
    %c0_i32_13 = arith.constant 0 : i32
    %21 = vector.broadcast %c0_i32_13 : i32 to vector<64x20xi32>
    %22 = arith.cmpi slt, %18, %21 : vector<64x20xi32>
    %c0_i32_14 = arith.constant 0 : i32
    %23 = arith.cmpi slt, %16, %c0_i32_14 : i32
    %24 = vector.broadcast %23 : i1 to vector<64x20xi1>
    %25 = vector.broadcast %24 : vector<64x20xi1> to vector<64x20xi1>
    %26 = arith.xori %22, %25 : vector<64x20xi1>
    %27 = arith.andi %26, %20 : vector<64x20xi1>
    %28 = vector.broadcast %16 : i32 to vector<64x20xi32>
    %29 = arith.addi %18, %28 : vector<64x20xi32>
    %30 = arith.select %27, %29, %18 : vector<64x20xi1>, vector<64x20xi32>
    %c0_i32_15 = arith.constant 0 : i32
    %31 = vector.broadcast %c0_i32_15 : i32 to vector<64x20xi32>
    %32 = arith.cmpi sgt, %30, %31 : vector<64x20xi32>
    %c7_i32 = arith.constant 7 : i32
    %33 = vector.broadcast %c7_i32 : i32 to vector<64x20xi32>
    %34 = arith.cmpi slt, %30, %33 : vector<64x20xi32>
    %cst_16 = arith.constant 0.000000e+00 : f32
    %35 = vector.broadcast %cst_16 : f32 to vector<64x3xf32>
    %c7 = arith.constant 7 : index
    %c0_17 = arith.constant 0 : index
    %36 = vector.load %arg5[%c7, %c0_17] : memref<192x20xf32, #tpu.memory_space<vmem>>, vector<64x20xf32>
    %cst_18 = arith.constant 0.000000e+00 : f32
    %37 = vector.broadcast %cst_18 : f32 to vector<64x20xf32>
    %38 = arith.select %32, %36, %37 : vector<64x20xi1>, vector<64x20xf32>
    %c0_19 = arith.constant 0 : index
    %c0_20 = arith.constant 0 : index
    %c0_21 = arith.constant 0 : index
    %39 = vector.load %arg3[%c0_19, %c0_20, %c0_21] : memref<9x20x3xf32, #tpu.memory_space<vmem>>, vector<1x20x3xf32>
    %40 = vector.shape_cast %39 : vector<1x20x3xf32> to vector<20x3xf32>
    %cst_22 = arith.constant dense<0.000000e+00> : vector<64x3xf32>
    %41 = tpu.matmul %38, %40, %cst_22 {dimension_numbers = #tpu.dot_dimension_numbers<[1], [0], [0], [1], [0, 0, 1, 1], [], []>} : vector<64x20xf32>, vector<20x3xf32>, vector<64x3xf32> -> vector<64x3xf32>
    %42 = arith.addf %35, %41 : vector<64x3xf32>
    %c8 = arith.constant 8 : index
    %c0_23 = arith.constant 0 : index
    %43 = vector.load %arg5[%c8, %c0_23] : memref<192x20xf32, #tpu.memory_space<vmem>>, vector<64x20xf32>
    %c1 = arith.constant 1 : index
    %c0_24 = arith.constant 0 : index
    %c0_25 = arith.constant 0 : index
    %44 = vector.load %arg3[%c1, %c0_24, %c0_25] : memref<9x20x3xf32, #tpu.memory_space<vmem>>, vector<1x20x3xf32>
    %45 = vector.shape_cast %44 : vector<1x20x3xf32> to vector<20x3xf32>
    %cst_26 = arith.constant dense<0.000000e+00> : vector<64x3xf32>
    %46 = tpu.matmul %43, %45, %cst_26 {dimension_numbers = #tpu.dot_dimension_numbers<[1], [0], [0], [1], [0, 0, 1, 1], [], []>} : vector<64x20xf32>, vector<20x3xf32>, vector<64x3xf32> -> vector<64x3xf32>
    %47 = arith.addf %42, %46 : vector<64x3xf32>
    %c9 = arith.constant 9 : index
    %c0_27 = arith.constant 0 : index
    %48 = vector.load %arg5[%c9, %c0_27] : memref<192x20xf32, #tpu.memory_space<vmem>>, vector<64x20xf32>
    %cst_28 = arith.constant 0.000000e+00 : f32
    %49 = vector.broadcast %cst_28 : f32 to vector<64x20xf32>
    %50 = arith.select %34, %48, %49 : vector<64x20xi1>, vector<64x20xf32>
    %c2 = arith.constant 2 : index
    %c0_29 = arith.constant 0 : index
    %c0_30 = arith.constant 0 : index
    %51 = vector.load %arg3[%c2, %c0_29, %c0_30] : memref<9x20x3xf32, #tpu.memory_space<vmem>>, vector<1x20x3xf32>
    %52 = vector.shape_cast %51 : vector<1x20x3xf32> to vector<20x3xf32>
    %cst_31 = arith.constant dense<0.000000e+00> : vector<64x3xf32>
    %53 = tpu.matmul %50, %52, %cst_31 {dimension_numbers = #tpu.dot_dimension_numbers<[1], [0], [0], [1], [0, 0, 1, 1], [], []>} : vector<64x20xf32>, vector<20x3xf32>, vector<64x3xf32> -> vector<64x3xf32>
    %54 = arith.addf %47, %53 : vector<64x3xf32>
    %c15 = arith.constant 15 : index
    %c0_32 = arith.constant 0 : index
    %55 = vector.load %arg5[%c15, %c0_32] : memref<192x20xf32, #tpu.memory_space<vmem>>, vector<64x20xf32>
    %cst_33 = arith.constant 0.000000e+00 : f32
    %56 = vector.broadcast %cst_33 : f32 to vector<64x20xf32>
    %57 = arith.select %32, %55, %56 : vector<64x20xi1>, vector<64x20xf32>
    %c3 = arith.constant 3 : index
    %c0_34 = arith.constant 0 : index
    %c0_35 = arith.constant 0 : index
    %58 = vector.load %arg3[%c3, %c0_34, %c0_35] : memref<9x20x3xf32, #tpu.memory_space<vmem>>, vector<1x20x3xf32>
    %59 = vector.shape_cast %58 : vector<1x20x3xf32> to vector<20x3xf32>
    %cst_36 = arith.constant dense<0.000000e+00> : vector<64x3xf32>
    %60 = tpu.matmul %57, %59, %cst_36 {dimension_numbers = #tpu.dot_dimension_numbers<[1], [0], [0], [1], [0, 0, 1, 1], [], []>} : vector<64x20xf32>, vector<20x3xf32>, vector<64x3xf32> -> vector<64x3xf32>
    %61 = arith.addf %54, %60 : vector<64x3xf32>
    %c16_37 = arith.constant 16 : index
    %c0_38 = arith.constant 0 : index
    %62 = vector.load %arg5[%c16_37, %c0_38] : memref<192x20xf32, #tpu.memory_space<vmem>>, vector<64x20xf32>
    %c4 = arith.constant 4 : index
    %c0_39 = arith.constant 0 : index
    %c0_40 = arith.constant 0 : index
    %63 = vector.load %arg3[%c4, %c0_39, %c0_40] : memref<9x20x3xf32, #tpu.memory_space<vmem>>, vector<1x20x3xf32>
    %64 = vector.shape_cast %63 : vector<1x20x3xf32> to vector<20x3xf32>
    %cst_41 = arith.constant dense<0.000000e+00> : vector<64x3xf32>
    %65 = tpu.matmul %62, %64, %cst_41 {dimension_numbers = #tpu.dot_dimension_numbers<[1], [0], [0], [1], [0, 0, 1, 1], [], []>} : vector<64x20xf32>, vector<20x3xf32>, vector<64x3xf32> -> vector<64x3xf32>
    %66 = arith.addf %61, %65 : vector<64x3xf32>
    %c17 = arith.constant 17 : index
    %c0_42 = arith.constant 0 : index
    %67 = vector.load %arg5[%c17, %c0_42] : memref<192x20xf32, #tpu.memory_space<vmem>>, vector<64x20xf32>
    %cst_43 = arith.constant 0.000000e+00 : f32
    %68 = vector.broadcast %cst_43 : f32 to vector<64x20xf32>
    %69 = arith.select %34, %67, %68 : vector<64x20xi1>, vector<64x20xf32>
    %c5 = arith.constant 5 : index
    %c0_44 = arith.constant 0 : index
    %c0_45 = arith.constant 0 : index
    %70 = vector.load %arg3[%c5, %c0_44, %c0_45] : memref<9x20x3xf32, #tpu.memory_space<vmem>>, vector<1x20x3xf32>
    %71 = vector.shape_cast %70 : vector<1x20x3xf32> to vector<20x3xf32>
    %cst_46 = arith.constant dense<0.000000e+00> : vector<64x3xf32>
    %72 = tpu.matmul %69, %71, %cst_46 {dimension_numbers = #tpu.dot_dimension_numbers<[1], [0], [0], [1], [0, 0, 1, 1], [], []>} : vector<64x20xf32>, vector<20x3xf32>, vector<64x3xf32> -> vector<64x3xf32>
    %73 = arith.addf %66, %72 : vector<64x3xf32>
    %c23 = arith.constant 23 : index
    %c0_47 = arith.constant 0 : index
    %74 = vector.load %arg5[%c23, %c0_47] : memref<192x20xf32, #tpu.memory_space<vmem>>, vector<64x20xf32>
    %cst_48 = arith.constant 0.000000e+00 : f32
    %75 = vector.broadcast %cst_48 : f32 to vector<64x20xf32>
    %76 = arith.select %32, %74, %75 : vector<64x20xi1>, vector<64x20xf32>
    %c6 = arith.constant 6 : index
    %c0_49 = arith.constant 0 : index
    %c0_50 = arith.constant 0 : index
    %77 = vector.load %arg3[%c6, %c0_49, %c0_50] : memref<9x20x3xf32, #tpu.memory_space<vmem>>, vector<1x20x3xf32>
    %78 = vector.shape_cast %77 : vector<1x20x3xf32> to vector<20x3xf32>
    %cst_51 = arith.constant dense<0.000000e+00> : vector<64x3xf32>
    %79 = tpu.matmul %76, %78, %cst_51 {dimension_numbers = #tpu.dot_dimension_numbers<[1], [0], [0], [1], [0, 0, 1, 1], [], []>} : vector<64x20xf32>, vector<20x3xf32>, vector<64x3xf32> -> vector<64x3xf32>
    %80 = arith.addf %73, %79 : vector<64x3xf32>
    %c24 = arith.constant 24 : index
    %c0_52 = arith.constant 0 : index
    %81 = vector.load %arg5[%c24, %c0_52] : memref<192x20xf32, #tpu.memory_space<vmem>>, vector<64x20xf32>
    %c7_53 = arith.constant 7 : index
    %c0_54 = arith.constant 0 : index
    %c0_55 = arith.constant 0 : index
    %82 = vector.load %arg3[%c7_53, %c0_54, %c0_55] : memref<9x20x3xf32, #tpu.memory_space<vmem>>, vector<1x20x3xf32>
    %83 = vector.shape_cast %82 : vector<1x20x3xf32> to vector<20x3xf32>
    %cst_56 = arith.constant dense<0.000000e+00> : vector<64x3xf32>
    %84 = tpu.matmul %81, %83, %cst_56 {dimension_numbers = #tpu.dot_dimension_numbers<[1], [0], [0], [1], [0, 0, 1, 1], [], []>} : vector<64x20xf32>, vector<20x3xf32>, vector<64x3xf32> -> vector<64x3xf32>
    %85 = arith.addf %80, %84 : vector<64x3xf32>
    %c25 = arith.constant 25 : index
    %c0_57 = arith.constant 0 : index
    %86 = vector.load %arg5[%c25, %c0_57] : memref<192x20xf32, #tpu.memory_space<vmem>>, vector<64x20xf32>
    %cst_58 = arith.constant 0.000000e+00 : f32
    %87 = vector.broadcast %cst_58 : f32 to vector<64x20xf32>
    %88 = arith.select %34, %86, %87 : vector<64x20xi1>, vector<64x20xf32>
    %c8_59 = arith.constant 8 : index
    %c0_60 = arith.constant 0 : index
    %c0_61 = arith.constant 0 : index
    %89 = vector.load %arg3[%c8_59, %c0_60, %c0_61] : memref<9x20x3xf32, #tpu.memory_space<vmem>>, vector<1x20x3xf32>
    %90 = vector.shape_cast %89 : vector<1x20x3xf32> to vector<20x3xf32>
    %cst_62 = arith.constant dense<0.000000e+00> : vector<64x3xf32>
    %91 = tpu.matmul %88, %90, %cst_62 {dimension_numbers = #tpu.dot_dimension_numbers<[1], [0], [0], [1], [0, 0, 1, 1], [], []>} : vector<64x20xf32>, vector<20x3xf32>, vector<64x3xf32> -> vector<64x3xf32>
    %92 = arith.addf %85, %91 : vector<64x3xf32>
    %c0_63 = arith.constant 0 : index
    %c0_64 = arith.constant 0 : index
    %93 = vector.load %arg4[%c0_63, %c0_64] : memref<128x3xf32, #tpu.memory_space<vmem>>, vector<64x3xf32>
    tpu.vector_store %arg4[%c0_63, %c0_64], %92 {strides = array<i32>} : memref<128x3xf32, #tpu.memory_space<vmem>>, vector<64x3xf32>,
    %cst_65 = arith.constant 0.000000e+00 : f32
    %94 = vector.broadcast %cst_65 : f32 to vector<64x3xf32>
    %c103 = arith.constant 103 : index
    %c0_66 = arith.constant 0 : index
    %95 = vector.load %arg5[%c103, %c0_66] : memref<192x20xf32, #tpu.memory_space<vmem>>, vector<64x20xf32>
    %cst_67 = arith.constant 0.000000e+00 : f32
    %96 = vector.broadcast %cst_67 : f32 to vector<64x20xf32>
    %97 = arith.select %32, %95, %96 : vector<64x20xi1>, vector<64x20xf32>
    %c0_68 = arith.constant 0 : index
    %c0_69 = arith.constant 0 : index
    %c0_70 = arith.constant 0 : index
    %98 = vector.load %arg3[%c0_68, %c0_69, %c0_70] : memref<9x20x3xf32, #tpu.memory_space<vmem>>, vector<1x20x3xf32>
    %99 = vector.shape_cast %98 : vector<1x20x3xf32> to vector<20x3xf32>
    %cst_71 = arith.constant dense<0.000000e+00> : vector<64x3xf32>
    %100 = tpu.matmul %97, %99, %cst_71 {dimension_numbers = #tpu.dot_dimension_numbers<[1], [0], [0], [1], [0, 0, 1, 1], [], []>} : vector<64x20xf32>, vector<20x3xf32>, vector<64x3xf32> -> vector<64x3xf32>
    %101 = arith.addf %94, %100 : vector<64x3xf32>
    %c104 = arith.constant 104 : index
    %c0_72 = arith.constant 0 : index
    %102 = vector.load %arg5[%c104, %c0_72] : memref<192x20xf32, #tpu.memory_space<vmem>>, vector<64x20xf32>
    %c1_73 = arith.constant 1 : index
    %c0_74 = arith.constant 0 : index
    %c0_75 = arith.constant 0 : index
    %103 = vector.load %arg3[%c1_73, %c0_74, %c0_75] : memref<9x20x3xf32, #tpu.memory_space<vmem>>, vector<1x20x3xf32>
    %104 = vector.shape_cast %103 : vector<1x20x3xf32> to vector<20x3xf32>
    %cst_76 = arith.constant dense<0.000000e+00> : vector<64x3xf32>
    %105 = tpu.matmul %102, %104, %cst_76 {dimension_numbers = #tpu.dot_dimension_numbers<[1], [0], [0], [1], [0, 0, 1, 1], [], []>} : vector<64x20xf32>, vector<20x3xf32>, vector<64x3xf32> -> vector<64x3xf32>
    %106 = arith.addf %101, %105 : vector<64x3xf32>
    %c105 = arith.constant 105 : index
    %c0_77 = arith.constant 0 : index
    %107 = vector.load %arg5[%c105, %c0_77] : memref<192x20xf32, #tpu.memory_space<vmem>>, vector<64x20xf32>
    %cst_78 = arith.constant 0.000000e+00 : f32
    %108 = vector.broadcast %cst_78 : f32 to vector<64x20xf32>
    %109 = arith.select %34, %107, %108 : vector<64x20xi1>, vector<64x20xf32>
    %c2_79 = arith.constant 2 : index
    %c0_80 = arith.constant 0 : index
    %c0_81 = arith.constant 0 : index
    %110 = vector.load %arg3[%c2_79, %c0_80, %c0_81] : memref<9x20x3xf32, #tpu.memory_space<vmem>>, vector<1x20x3xf32>
    %111 = vector.shape_cast %110 : vector<1x20x3xf32> to vector<20x3xf32>
    %cst_82 = arith.constant dense<0.000000e+00> : vector<64x3xf32>
    %112 = tpu.matmul %109, %111, %cst_82 {dimension_numbers = #tpu.dot_dimension_numbers<[1], [0], [0], [1], [0, 0, 1, 1], [], []>} : vector<64x20xf32>, vector<20x3xf32>, vector<64x3xf32> -> vector<64x3xf32>
    %113 = arith.addf %106, %112 : vector<64x3xf32>
    %c111 = arith.constant 111 : index
    %c0_83 = arith.constant 0 : index
    %114 = vector.load %arg5[%c111, %c0_83] : memref<192x20xf32, #tpu.memory_space<vmem>>, vector<64x20xf32>
    %cst_84 = arith.constant 0.000000e+00 : f32
    %115 = vector.broadcast %cst_84 : f32 to vector<64x20xf32>
    %116 = arith.select %32, %114, %115 : vector<64x20xi1>, vector<64x20xf32>
    %c3_85 = arith.constant 3 : index
    %c0_86 = arith.constant 0 : index
    %c0_87 = arith.constant 0 : index
    %117 = vector.load %arg3[%c3_85, %c0_86, %c0_87] : memref<9x20x3xf32, #tpu.memory_space<vmem>>, vector<1x20x3xf32>
    %118 = vector.shape_cast %117 : vector<1x20x3xf32> to vector<20x3xf32>
    %cst_88 = arith.constant dense<0.000000e+00> : vector<64x3xf32>
    %119 = tpu.matmul %116, %118, %cst_88 {dimension_numbers = #tpu.dot_dimension_numbers<[1], [0], [0], [1], [0, 0, 1, 1], [], []>} : vector<64x20xf32>, vector<20x3xf32>, vector<64x3xf32> -> vector<64x3xf32>
    %120 = arith.addf %113, %119 : vector<64x3xf32>
    %c112_89 = arith.constant 112 : index
    %c0_90 = arith.constant 0 : index
    %121 = vector.load %arg5[%c112_89, %c0_90] : memref<192x20xf32, #tpu.memory_space<vmem>>, vector<64x20xf32>
    %c4_91 = arith.constant 4 : index
    %c0_92 = arith.constant 0 : index
    %c0_93 = arith.constant 0 : index
    %122 = vector.load %arg3[%c4_91, %c0_92, %c0_93] : memref<9x20x3xf32, #tpu.memory_space<vmem>>, vector<1x20x3xf32>
    %123 = vector.shape_cast %122 : vector<1x20x3xf32> to vector<20x3xf32>
    %cst_94 = arith.constant dense<0.000000e+00> : vector<64x3xf32>
    %124 = tpu.matmul %121, %123, %cst_94 {dimension_numbers = #tpu.dot_dimension_numbers<[1], [0], [0], [1], [0, 0, 1, 1], [], []>} : vector<64x20xf32>, vector<20x3xf32>, vector<64x3xf32> -> vector<64x3xf32>
    %125 = arith.addf %120, %124 : vector<64x3xf32>
    %c113 = arith.constant 113 : index
    %c0_95 = arith.constant 0 : index
    %126 = vector.load %arg5[%c113, %c0_95] : memref<192x20xf32, #tpu.memory_space<vmem>>, vector<64x20xf32>
    %cst_96 = arith.constant 0.000000e+00 : f32
    %127 = vector.broadcast %cst_96 : f32 to vector<64x20xf32>
    %128 = arith.select %34, %126, %127 : vector<64x20xi1>, vector<64x20xf32>
    %c5_97 = arith.constant 5 : index
    %c0_98 = arith.constant 0 : index
    %c0_99 = arith.constant 0 : index
    %129 = vector.load %arg3[%c5_97, %c0_98, %c0_99] : memref<9x20x3xf32, #tpu.memory_space<vmem>>, vector<1x20x3xf32>
    %130 = vector.shape_cast %129 : vector<1x20x3xf32> to vector<20x3xf32>
    %cst_100 = arith.constant dense<0.000000e+00> : vector<64x3xf32>
    %131 = tpu.matmul %128, %130, %cst_100 {dimension_numbers = #tpu.dot_dimension_numbers<[1], [0], [0], [1], [0, 0, 1, 1], [], []>} : vector<64x20xf32>, vector<20x3xf32>, vector<64x3xf32> -> vector<64x3xf32>
    %132 = arith.addf %125, %131 : vector<64x3xf32>
    %c119 = arith.constant 119 : index
    %c0_101 = arith.constant 0 : index
    %133 = vector.load %arg5[%c119, %c0_101] : memref<192x20xf32, #tpu.memory_space<vmem>>, vector<64x20xf32>
    %cst_102 = arith.constant 0.000000e+00 : f32
    %134 = vector.broadcast %cst_102 : f32 to vector<64x20xf32>
    %135 = arith.select %32, %133, %134 : vector<64x20xi1>, vector<64x20xf32>
    %c6_103 = arith.constant 6 : index
    %c0_104 = arith.constant 0 : index
    %c0_105 = arith.constant 0 : index
    %136 = vector.load %arg3[%c6_103, %c0_104, %c0_105] : memref<9x20x3xf32, #tpu.memory_space<vmem>>, vector<1x20x3xf32>
    %137 = vector.shape_cast %136 : vector<1x20x3xf32> to vector<20x3xf32>
    %cst_106 = arith.constant dense<0.000000e+00> : vector<64x3xf32>
    %138 = tpu.matmul %135, %137, %cst_106 {dimension_numbers = #tpu.dot_dimension_numbers<[1], [0], [0], [1], [0, 0, 1, 1], [], []>} : vector<64x20xf32>, vector<20x3xf32>, vector<64x3xf32> -> vector<64x3xf32>
    %139 = arith.addf %132, %138 : vector<64x3xf32>
    %c120 = arith.constant 120 : index
    %c0_107 = arith.constant 0 : index
    %140 = vector.load %arg5[%c120, %c0_107] : memref<192x20xf32, #tpu.memory_space<vmem>>, vector<64x20xf32>
    %c7_108 = arith.constant 7 : index
    %c0_109 = arith.constant 0 : index
    %c0_110 = arith.constant 0 : index
    %141 = vector.load %arg3[%c7_108, %c0_109, %c0_110] : memref<9x20x3xf32, #tpu.memory_space<vmem>>, vector<1x20x3xf32>
    %142 = vector.shape_cast %141 : vector<1x20x3xf32> to vector<20x3xf32>
    %cst_111 = arith.constant dense<0.000000e+00> : vector<64x3xf32>
    %143 = tpu.matmul %140, %142, %cst_111 {dimension_numbers = #tpu.dot_dimension_numbers<[1], [0], [0], [1], [0, 0, 1, 1], [], []>} : vector<64x20xf32>, vector<20x3xf32>, vector<64x3xf32> -> vector<64x3xf32>
    %144 = arith.addf %139, %143 : vector<64x3xf32>
    %c121 = arith.constant 121 : index
    %c0_112 = arith.constant 0 : index
    %145 = vector.load %arg5[%c121, %c0_112] : memref<192x20xf32, #tpu.memory_space<vmem>>, vector<64x20xf32>
    %cst_113 = arith.constant 0.000000e+00 : f32
    %146 = vector.broadcast %cst_113 : f32 to vector<64x20xf32>
    %147 = arith.select %34, %145, %146 : vector<64x20xi1>, vector<64x20xf32>
    %c8_114 = arith.constant 8 : index
    %c0_115 = arith.constant 0 : index
    %c0_116 = arith.constant 0 : index
    %148 = vector.load %arg3[%c8_114, %c0_115, %c0_116] : memref<9x20x3xf32, #tpu.memory_space<vmem>>, vector<1x20x3xf32>
    %149 = vector.shape_cast %148 : vector<1x20x3xf32> to vector<20x3xf32>
    %cst_117 = arith.constant dense<0.000000e+00> : vector<64x3xf32>
    %150 = tpu.matmul %147, %149, %cst_117 {dimension_numbers = #tpu.dot_dimension_numbers<[1], [0], [0], [1], [0, 0, 1, 1], [], []>} : vector<64x20xf32>, vector<20x3xf32>, vector<64x3xf32> -> vector<64x3xf32>
    %151 = arith.addf %144, %150 : vector<64x3xf32>
    %c64 = arith.constant 64 : index
    %c0_118 = arith.constant 0 : index
    %152 = vector.load %arg4[%c64, %c0_118] : memref<128x3xf32, #tpu.memory_space<vmem>>, vector<64x3xf32>
    tpu.vector_store %arg4[%c64, %c0_118], %151 {strides = array<i32>} : memref<128x3xf32, #tpu.memory_space<vmem>>, vector<64x3xf32>,
    return
  }
  func.func @transform_0(%arg0: i32) -> (i32, i32) {
    %c0_i32 = arith.constant 0 : i32
    %c0_i32_0 = arith.constant 0 : i32
    %c0_i32_1 = arith.constant 0 : i32
    return %c0_i32, %c0_i32_0 : i32, i32
  }
  func.func @transform_1(%arg0: i32) -> (i32, i32) {
    %c0_i32 = arith.constant 0 : i32
    %c0_i32_0 = arith.constant 0 : i32
    %c0_i32_1 = arith.constant 0 : i32
    return %c0_i32, %c0_i32_0 : i32, i32
  }
  func.func @transform_2(%arg0: i32) -> (i32, i32, i32) {
    %c0_i32 = arith.constant 0 : i32
    %c0_i32_0 = arith.constant 0 : i32
    %c0_i32_1 = arith.constant 0 : i32
    %c0_i32_2 = arith.constant 0 : i32
    return %c0_i32, %c0_i32_0, %c0_i32_1 : i32, i32, i32
  }
  func.func @transform_3(%arg0: i32) -> (i32, i32) {
    %c0_i32 = arith.constant 0 : i32
    %c0_i32_0 = arith.constant 0 : i32
    %c0_i32_1 = arith.constant 0 : i32
    return %c0_i32, %c0_i32_0 : i32, i32
  }
}

</mosaic_0001>

<bundles_post_ra>
// kernel: tpu_custom_call.1
= control target key start
LH: loop header
LB: loop body
LE: loop exit
PB: predicated region body
PF: predicated region fallthrough
CT: control target
= control target key end

     0   :  { %vm83_vm0 = vcmask 1042432   ;;  %vm34_vm1 = vcmask 220160   ;;  %vm4223_vm2 = vmmov 1   ;;  %vm248_vm4 = vcmask 162816   ;;  %s5308_s1 = inlined_call_operand.vmem [shape: f32[27,20], index: 1, kind: input, shape index: {}]   ;;  %s5309_s0 = inlined_call_operand.vmem [shape: f32[128,27], index: 0, kind: input, shape index: {}]   ;;  %s5310_s2 = inlined_call_operand.vmem [shape: f32[9,20,3], index: 2, kind: input, shape index: {}]   ;;  %s5311_s3 = inlined_call_operand.vmem [shape: f32[128,3], index: 3, kind: output, shape index: {}]  }
   0x1   :  { %v30_v0 = vld [vmem:[%s5308_s1] sm:$0xff]  ;;  %v31_v1 = vld [vmem:[%s5308_s1 + $0x8] sm:$0xff]  ;;  %v32_v2 = vld [vmem:[%s5308_s1 + $0x10] sm:$0xff]  ;;  %v4224_v25 = vmov 0.0   ;;  %vm5322_vm5 = vcmask 1043456   ;;  %v273_v49 = vlaneseq }
   0x2   :  { %v4007_v3 = vpack.c.bf16 %v31_v1, %v30_v0  ;;  %v33_v4 = vld [vmem:[%s5308_s1 + $0x18] sm:$0x7]  ;;  %v14_v5 = vld [vmem:[%s5309_s0] sm:$0xff]  ;;  %vm4012_vm3 = vmpackc.low %vm83_vm0, %vm4223_vm2  ;;  %250 = vst.msk [vmem:[#allocation2 + $0x8] sm:$0xff] %vm248_vm4, %v4224_v25 }
   0x3   :  { %v4011_v6 = vpack.c.bf16 %v33_v4, %v32_v2  ;;  %3659 = vmatprep.mubr.msk.f32.mxu0 %vm34_vm1, %v14_v5  ;;  %v22_v7 = vld [vmem:[%s5309_s0 + $0x40] sm:$0xff]  ;;  %v3223_v8 = vld [vmem:[%s5310_s2 + $0x18] sm:$0xff]  ;;  %v15_v10 = vld [vmem:[%s5309_s0 + $0x8] sm:$0xff]  ;;  %249 = vst.msk [vmem:[#allocation2] sm:$0xff] %vm248_vm4, %v4224_v25  ;;  %v4370_v61 = vshrl.u32 %v273_v49, 7 }
   0x4   :  { %4008 = vmatprep.subr.bf16.mxu0 %v4007_v3  ;;  %4089 = vmatprep.subr.bf16.mxu1 %v4007_v3  ;;  %v3224_v9 = vld [vmem:[%s5310_s2 + $0x20] sm:$0xff]  ;;  %v23_v11 = vld [vmem:[%s5309_s0 + $0x48] sm:$0xff]  ;;  %v16_v13 = vld [vmem:[%s5309_s0 + $0x10] sm:$0xff]  ;;  %251 = vst.msk [vmem:[#allocation2 + $0x50] sm:$0xff] %vm248_vm4, %v4224_v25 }
   0x5   :  { %4010 = vmatpush3.bf16.msra.mxu0 %v4007_v3  ;;  %4091 = vmatpush3.bf16.msra.mxu1 %v4007_v3  ;;  %v4017_v12 = vpack.c.bf16 %v3224_v9, %v3223_v8  ;;  %v24_v14 = vld [vmem:[%s5309_s0 + $0x50] sm:$0xff]  ;;  %v17_v15 = vld [vmem:[%s5309_s0 + $0x18] sm:$0xff]  ;;  %v18_v17 = vld [vmem:[%s5309_s0 + $0x20] sm:$0xff]  ;;  %252 = vst.msk [vmem:[#allocation2 + $0x58] sm:$0xff] %vm248_vm4, %v4224_v25 }
   0x6   :  { %4013 = vmatprep.subr.msk.bf16.mxu0 %vm4012_vm3, %v4011_v6  ;;  %4090 = vmatprep.subr.msk.bf16.mxu1 %vm4012_vm3, %v4011_v6  ;;  %v25_v16 = vld [vmem:[%s5309_s0 + $0x58] sm:$0xff]  ;;  %v26_v18 = vld [vmem:[%s5309_s0 + $0x60] sm:$0xff]  ;;  %v19_v19 = vld [vmem:[%s5309_s0 + $0x28] sm:$0xff]  ;;  %261 = vst.msk [vmem:[#allocation2 + $0x60] sm:$0xff] %vm248_vm4, %v4224_v25 }
   0x7   :  { %3671 = vmatprep.mubr.msk.f32.mxu1 %vm34_vm1, %v22_v7  ;;  %v27_v20 = vld [vmem:[%s5309_s0 + $0x68] sm:$0xff]  ;;  %v20_v21 = vld [vmem:[%s5309_s0 + $0x30] sm:$0xff]  ;;  %v21_v23 = vld [vmem:[%s5309_s0 + $0x38] sm:$0xff]  ;;  %262 = vst.msk [vmem:[#allocation2 + $0x68] sm:$0xff] %vm248_vm4, %v4224_v25 }
   0x8   :  { %v28_v22 = vld [vmem:[%s5309_s0 + $0x70] sm:$0xff]  ;;  %v29_v24 = vld [vmem:[%s5309_s0 + $0x78] sm:$0xff]  ;;  %263 = vst.msk [vmem:[#allocation2 + $0xb0] sm:$0xff] %vm248_vm4, %v4224_v25  ;;  %264 = vst.msk [vmem:[#allocation2 + $0xb8] sm:$0xff] %vm248_vm4, %v4224_v25 }
   0x9   :  { %4016 = vmatpush3.bf16.msk.msra.mxu0 %vm4012_vm3, %v4011_v6  ;;  %4092 = vmatpush3.bf16.msk.msra.mxu1 %vm4012_vm3, %v4011_v6  ;;  %v3225_v26 = vld [vmem:[%s5310_s2 + $0x28] sm:$0xf]  ;;  %v410_v30 = vld [vmem:[%s5310_s2] sm:$0xff]  ;;  %v412_v60 = vld [vmem:[%s5310_s2 + $0x10] sm:$0xf] }
   0xa   :  { %4018 = vmatprep.subr.bf16.mxu1 %v4017_v12  ;;  %4054 = vmatprep.subr.bf16.mxu0 %v4017_v12  ;;  %v3330_v27 = vld [vmem:[%s5310_s2 + $0x28] sm:$0xf]  ;;  %v1821_v0 = vld [vmem:[%s5310_s2 + $0x10] sm:$0xf]  ;;  %v3245_v2 = vld [vmem:[%s5310_s2 + $0x38] sm:$0xff] }
   0xb   :  { %v413_v28 = vld [vmem:[#allocation2 + $0x8] sm:$0xff]  ;;  %v3244_v1 = vld [vmem:[%s5310_s2 + $0x30] sm:$0xff] }
   0xc   :  { %3660 = vmatmul.mubr.msk.f32.vlgmr.msra.gmra.mrb[0].mxu0 %vm34_vm1, %v15_v10  ;;  %3672 = vmatmul.mubr.msk.f32.vlgmr.msra.gmra.mrb[0].mxu1 %vm34_vm1, %v23_v11  ;;  %v411_v31 = vld [vmem:[%s5310_s2 + $0x8] sm:$0xff] }
   0xd   :  { %3662 = vmatprep.mubr.msk.f32.mxu0 %vm34_vm1, %v16_v13  ;;  %3674 = vmatprep.mubr.msk.f32.mxu1 %vm34_vm1, %v24_v14  ;;  %v4021_v32 = vpack.c.bf16 %v411_v31, %v410_v30  ;;  %v4403_v13 = vpack.c.bf16 %v3245_v2, %v3244_v1  ;;  %v279_v31 = vadd.s32 40, %v4370_v61 }
   0xe   :  { %4020 = vmatpush3.bf16.msra.mxu1 %v4017_v12  ;;  %4056 = vmatpush3.bf16.msra.mxu0 %v4017_v12  ;;  %v1822_v29 = vld [vmem:[#allocation2 + $0x68] sm:$0xff] }
   0xf   :  { %3687 = vmatprep.subr.msk.mxu1 %vm5322_vm5, %v3225_v26  ;;  %3849 = vmatprep.subr.msk.mxu0 %vm5322_vm5, %v3330_v27 }
  0x10   :  { %3663 = vmatmul.mubr.msk.f32.gmra.mrb[2].mxu0 %vm34_vm1, %v17_v15  ;;  %3675 = vmatmul.mubr.msk.f32.gmra.mrb[2].mxu1 %vm34_vm1, %v25_v16  ;;  %v275_v16 = vadd.s32 8, %v4370_v61 }
  0x11   :  { %3665 = vmatprep.mubr.msk.f32.mxu0 %vm34_vm1, %v18_v17  ;;  %3677 = vmatprep.mubr.msk.f32.mxu1 %vm34_vm1, %v26_v18  ;;  %v286_v17 = vand.u32 7, %v4370_v61  ;;  %v276_v18 = vadd.s32 16, %v4370_v61 }
  0x12   :  { %3688 = vmatpush3.msk.msra.mxu1 %vm5322_vm5, %v3225_v26  ;;  %3850 = vmatpush3.msk.msra.mxu0 %vm5322_vm5, %v3330_v27  ;;  %v293_v26 = vand.u32 7, %v275_v16  ;;  %v278_v27 = vadd.s32 32, %v4370_v61 }
  0x13   :  { %4022 = vmatprep.subr.bf16.mxu1 %v4021_v32  ;;  %4058 = vmatprep.subr.bf16.mxu0 %v4021_v32  ;;  %vm4446_vm6 = vcmp.gt.s32.totalorder %v286_v17, 0  ;;  %vm4506_vm10 = vcmp.lt.s32.totalorder %v286_v17, 7 }
  0x14   :  { %3666 = vmatmul.mubr.msk.f32.gmra.mrb[4].mxu0 %vm34_vm1, %v19_v19  ;;  %3678 = vmatmul.mubr.msk.f32.gmra.mrb[4].mxu1 %vm34_vm1, %v27_v20  ;;  %v4423_v19 = vadd.s32 24, %v4370_v61  ;;  %v394_v20 = vld [vmem:[#allocation2 + $0x7] sm:$0xff]  ;;  %vm4470_vm7 = vcmp.gt.s32.totalorder %v293_v26, 0  ;;  %vm4528_vm12 = vcmp.lt.s32.totalorder %v293_v26, 7 }
  0x15   :  { %3668 = vmatprep.mubr.msk.f32.mxu0 %vm34_vm1, %v20_v21  ;;  %3680 = vmatprep.mubr.msk.f32.mxu1 %vm34_vm1, %v28_v22 }
  0x16   :  { %v307_v30 = vand.u32 7, %v4423_v19 }
  0x18   :  { %3669 = vmatmul.mubr.msk.f32.gmra.mrb[6].mxu0 %vm34_vm1, %v21_v23  ;;  %3681 = vmatmul.mubr.msk.f32.gmra.mrb[6].mxu1 %vm34_vm1, %v29_v24  ;;  %v1803_v23 = vld [vmem:[#allocation2 + $0x67] sm:$0xff]  ;;  %vm4484_vm9 = vcmp.gt.s32.totalorder %v307_v30, 0  ;;  %vm4552_vm15 = vcmp.lt.s32.totalorder %v307_v30, 7 }
  0x19   :  { %3689 = vmatprep.mubr.msk.f32.mxu1 %vm248_vm4, %v413_v28  ;;  %3851 = vmatprep.mubr.msk.f32.mxu0 %vm248_vm4, %v1822_v29  ;;  %v300_v29 = vand.u32 7, %v276_v18  ;;  %v3411_v28 = vld [vmem:[%s5310_s2 + $0xb8] sm:$0xf] }
  0x1b   :  { %vm4480_vm8 = vcmp.gt.s32.totalorder %v300_v29, 0  ;;  %vm4532_vm13 = vcmp.lt.s32.totalorder %v300_v29, 7 }
  0xdf   :  { %v3661_v33 = vpop.f32.mrb[0].mxu0  ;;  %v3673_v34 = vpop.f32.mrb[0].mxu1 }
  0xe0   :  { %v233_v35 = vmax.f32 %v3661_v33, 0.0  ;;  %v241_v36 = vmax.f32 %v3673_v34, 0.0  ;;  %v153_v37 = vpop.f32.mrb[1].mxu0  ;;  %v193_v38 = vpop.f32.mrb[1].mxu1  ;;  %v1811_v33 = vsel %vm4446_vm6, %v1803_v23, 0.0  ;;  %v4457_v34 = vadd.s32 48, %v4370_v61 }
  0xe1   :  { %v232_v39 = vmax.f32 %v153_v37, 0.0  ;;  %v240_v40 = vmax.f32 %v193_v38, 0.0  ;;  %v5338_v38 = vmov 0 }
  0xe2   :  { %254 = vst.msk [vmem:[#allocation2 + $0x18] sm:$0xff] %vm248_vm4, %v233_v35  ;;  %266 = vst.msk [vmem:[#allocation2 + $0x78] sm:$0xff] %vm248_vm4, %v241_v36  ;;  %v4460_v35 = vadd.s32 56, %v4370_v61  ;;  %v5339_v38 = vsel %vm4470_vm7, 4294967295, %v5338_v38 }
  0xe3   :  { %253 = vst.msk [vmem:[#allocation2 + $0x10] sm:$0xff] %vm248_vm4, %v232_v39  ;;  %265 = vst.msk [vmem:[#allocation2 + $0x70] sm:$0xff] %vm248_vm4, %v240_v40  ;;  %v3664_v41 = vpop.f32.mrb[2].mxu0  ;;  %v3676_v42 = vpop.f32.mrb[2].mxu1 }
  0xe4   :  { %v235_v43 = vmax.f32 %v3664_v41, 0.0  ;;  %v243_v44 = vmax.f32 %v3676_v42, 0.0  ;;  %v163_v45 = vpop.f32.mrb[3].mxu0  ;;  %v203_v46 = vpop.f32.mrb[3].mxu1  ;;  %v314_v41 = vand.u32 7, %v278_v27  ;;  %v5312_v49 = vand.u32 7, %v4460_v35 }
  0xe5   :  { %v234_v47 = vmax.f32 %v163_v45, 0.0  ;;  %v242_v48 = vmax.f32 %v203_v46, 0.0 }
  0xe6   :  { %256 = vst.msk [vmem:[#allocation2 + $0x28] sm:$0xff] %vm248_vm4, %v235_v43  ;;  %268 = vst.msk [vmem:[#allocation2 + $0x88] sm:$0xff] %vm248_vm4, %v243_v44  ;;  %v321_v44 = vand.u32 7, %v279_v31  ;;  %vm4522_vm11 = vcmp.gt.s32.totalorder %v314_v41, 0  ;;  %vm4570_vm1 = vcmp.gt.s32.totalorder %v5312_v49, 0  ;;  %vm4574_vm2 = vcmp.lt.s32.totalorder %v314_v41, 7 }
  0xe7   :  { %255 = vst.msk [vmem:[#allocation2 + $0x20] sm:$0xff] %vm248_vm4, %v234_v47  ;;  %267 = vst.msk [vmem:[#allocation2 + $0x80] sm:$0xff] %vm248_vm4, %v242_v48  ;;  %v3667_v50 = vpop.f32.mrb[4].mxu0  ;;  %v3679_v51 = vpop.f32.mrb[4].mxu1  ;;  %v3246_v47 = vld [vmem:[%s5310_s2 + $0x40] sm:$0xf] }
  0xe8   :  { %v237_v52 = vmax.f32 %v3667_v50, 0.0  ;;  %v245_v53 = vmax.f32 %v3679_v51, 0.0  ;;  %v173_v54 = vpop.f32.mrb[5].mxu0  ;;  %v213_v55 = vpop.f32.mrb[5].mxu1  ;;  %v5313_v48 = vand.u32 7, %v4457_v34  ;;  %vm4546_vm14 = vcmp.gt.s32.totalorder %v321_v44, 0 }
  0xe9   :  { %v236_v56 = vmax.f32 %v173_v54, 0.0  ;;  %v244_v57 = vmax.f32 %v213_v55, 0.0  ;;  %v4387_v7 = vld [vmem:[#allocation2 + $0x18] sm:$0xff]  ;;  %v3256_v54 = vld [vmem:[%s5310_s2 + $0x48] sm:$0xff]  ;;  %v3257_v55 = vld [vmem:[%s5310_s2 + $0x50] sm:$0xff]  ;;  %vm4578_vm3 = vcmp.lt.s32.totalorder %v321_v44, 7 }
  0xea   :  { %258 = vst.msk [vmem:[#allocation2 + $0x38] sm:$0xff] %vm248_vm4, %v237_v52  ;;  %270 = vst.msk [vmem:[#allocation2 + $0x98] sm:$0xff] %vm248_vm4, %v245_v53  ;;  %v4363_v58 = vld [vmem:[#allocation2 + $0x10] sm:$0xff]  ;;  %v4389_v8 = vld [vmem:[#allocation2 + $0x78] sm:$0xff]  ;;  %vm4562_vm0 = vcmp.gt.s32.totalorder %v5313_v48, 0  ;;  %v4597_v27 = vpack.c.bf16 %v3257_v55, %v3256_v54 }
  0xeb   :  { %v4365_v59 = vld [vmem:[#allocation2 + $0x70] sm:$0xff]  ;;  %257 = vst.msk [vmem:[#allocation2 + $0x30] sm:$0xff] %vm248_vm4, %v236_v56  ;;  %269 = vst.msk [vmem:[#allocation2 + $0x90] sm:$0xff] %vm248_vm4, %v244_v57  ;;  %v3670_v62 = vpop.f32.mrb[6].mxu0  ;;  %v3682_v63 = vpop.f32.mrb[6].mxu1  ;;  %3690 = vmatmul.mubr.msk.f32.vlgmr.msra.gmra.mrb[8].mxu1 %vm248_vm4, %v4363_v58 }
  0xec   :  { %3852 = vmatmul.mubr.msk.f32.vlgmr.msra.gmra.mrb[8].mxu0 %vm248_vm4, %v4365_v59  ;;  %v239_v3 = vmax.f32 %v3670_v62, 0.0  ;;  %v247_v4 = vmax.f32 %v3682_v63, 0.0  ;;  %4024 = vmatpush3.bf16.msra.mxu1 %v4021_v32  ;;  %v183_v5 = vpop.f32.mrb[7].mxu0  ;;  %v223_v6 = vpop.f32.mrb[7].mxu1  ;;  %v4474_v39 = vld [vmem:[#allocation2 + $0xf] sm:$0xff]  ;;  %v4488_v45 = vld [vmem:[#allocation2 + $0x17] sm:$0xff] }
  0xed   :  { %4060 = vmatpush3.bf16.msra.mxu0 %v4021_v32  ;;  %v238_v9 = vmax.f32 %v183_v5, 0.0  ;;  %v246_v10 = vmax.f32 %v223_v6, 0.0  ;;  %3692 = vmatprep.mubr.msk.f32.mxu1 %vm248_vm4, %v4387_v7  ;;  %v4411_v14 = vld [vmem:[#allocation2 + $0x28] sm:$0xff]  ;;  %v402_v32 = vsel %vm4446_vm6, %v394_v20, 0.0  ;;  %v4490_v46 = vld [vmem:[#allocation2 + $0x77] sm:$0xff]  ;;  %v403_v50 = vsel %vm4470_vm7, %v4474_v39, 0.0 }
  0xee   :  { %3854 = vmatprep.mubr.msk.f32.mxu0 %vm248_vm4, %v4389_v8  ;;  %260 = vst.msk [vmem:[#allocation2 + $0x48] sm:$0xff] %vm248_vm4, %v239_v3  ;;  %272 = vst.msk [vmem:[#allocation2 + $0xa8] sm:$0xff] %vm248_vm4, %v247_v4  ;;  %v4397_v11 = vld [vmem:[#allocation2 + $0x20] sm:$0xff]  ;;  %3705 = vmatprep.subr.msk.mxu1 %vm5322_vm5, %v412_v60  ;;  %v4413_v15 = vld [vmem:[#allocation2 + $0x88] sm:$0xff]  ;;  %v5348_v62 = vmov 0  ;;  %v5351_v63 = vmov 0 }
  0xef   :  { %v4399_v12 = vld [vmem:[#allocation2 + $0x80] sm:$0xff]  ;;  %3867 = vmatprep.subr.msk.mxu0 %vm5322_vm5, %v1821_v0  ;;  %259 = vst.msk [vmem:[#allocation2 + $0x40] sm:$0xff] %vm248_vm4, %v238_v9  ;;  %271 = vst.msk [vmem:[#allocation2 + $0xa0] sm:$0xff] %vm248_vm4, %v246_v10  ;;  %3693 = vmatmul.mubr.msk.f32.gmra.mrb[10].mxu1 %vm248_vm4, %v4397_v11  ;;  %v4476_v40 = vld [vmem:[#allocation2 + $0x6f] sm:$0xff]  ;;  %v5349_v62 = vsel %vm4528_vm12, 4294967295, %v5348_v62  ;;  %v5352_v63 = vsel %vm4532_vm13, 4294967295, %v5351_v63 }
  0xf0   :  { %3855 = vmatmul.mubr.msk.f32.gmra.mrb[10].mxu0 %vm248_vm4, %v4399_v12  ;;  %3695 = vmatprep.mubr.msk.f32.mxu1 %vm248_vm4, %v4411_v14  ;;  %v1812_v51 = vsel %vm4470_vm7, %v4476_v40, 0.0  ;;  %v3351_v52 = vld [vmem:[%s5310_s2 + $0x40] sm:$0xf]  ;;  %v4526_v61 = vld [vmem:[#allocation2 + $0x27] sm:$0xff]  ;;  %5350 = vst [vmem:[#allocation5_spill] sm:$0xff] %v5349_v62  ;;  %v1813_v1 = vsel %vm4480_vm8, %v4490_v46, 0.0 }
  0xf1   :  { %3857 = vmatprep.mubr.msk.f32.mxu0 %vm248_vm4, %v4413_v15  ;;  %3706 = vmatpush3.msk.msra.mxu1 %vm5322_vm5, %v412_v60  ;;  %v4437_v24 = vld [vmem:[#allocation2 + $0x38] sm:$0xff]  ;;  %v4544_v2 = vld [vmem:[#allocation2 + $0x87] sm:$0xff]  ;;  %v5355_v5 = vmov 0  ;;  %v5358_v9 = vmov 0  ;;  %v406_v20 = vsel %vm4522_vm11, %v4526_v61, 0.0 }
  0xf2   :  { %3868 = vmatpush3.msk.msra.mxu0 %vm5322_vm5, %v1821_v0  ;;  %v4427_v21 = vld [vmem:[#allocation2 + $0x30] sm:$0xff]  ;;  %4026 = vmatprep.subr.bf16.mxu1 %v4403_v13  ;;  %v4439_v25 = vld [vmem:[#allocation2 + $0x98] sm:$0xff]  ;;  %v404_v0 = vsel %vm4480_vm8, %v4488_v45, 0.0  ;;  %v5356_v5 = vsel %vm4552_vm15, 4294967295, %v5355_v5  ;;  %v5359_v9 = vsel %vm4562_vm0, 4294967295, %v5358_v9  ;;  %v1815_v31 = vsel %vm4522_vm11, %v4544_v2, 0.0 }
  0xf3   :  { %v4429_v22 = vld [vmem:[#allocation2 + $0x90] sm:$0xff]  ;;  %4062 = vmatprep.subr.bf16.mxu0 %v4403_v13  ;;  %3696 = vmatmul.mubr.msk.f32.gmra.mrb[12].mxu1 %vm248_vm4, %v4427_v21  ;;  %v4518_v56 = vld [vmem:[#allocation2 + $0x1f] sm:$0xff]  ;;  %5357 = vst [vmem:[#allocation6_spill] sm:$0xff] %v5356_v5  ;;  %v5367_v5 = vand.u32 7, %v4457_v34 }
  0xf4   :  { %3858 = vmatmul.mubr.msk.f32.gmra.mrb[12].mxu0 %vm248_vm4, %v4429_v22  ;;  %3698 = vmatprep.mubr.msk.f32.mxu1 %vm248_vm4, %v4437_v24  ;;  %v4520_v57 = vld [vmem:[#allocation2 + $0x7f] sm:$0xff]  ;;  %v4550_v4 = vld [vmem:[#allocation2 + $0x2f] sm:$0xff]  ;;  %v4566_v10 = vld [vmem:[#allocation2 + $0x37] sm:$0xff]  ;;  %v405_v18 = vsel %vm4484_vm9, %v4518_v56, 0.0 }
  0xf5   :  { %3860 = vmatprep.mubr.msk.f32.mxu0 %vm248_vm4, %v4439_v25  ;;  %v4558_v6 = vld [vmem:[#allocation2 + $0x8f] sm:$0xff]  ;;  %v1814_v19 = vsel %vm4484_vm9, %v4520_v57, 0.0  ;;  %v4593_v23 = vld [vmem:[#allocation2 + $0x97] sm:$0xff]  ;;  %v4613_v41 = vld [vmem:[#allocation2 + $0x21] sm:$0xff]  ;;  %v5397_v42 = vsel %vm4522_vm11, %v4566_v10, 0.0 }
  0xf6   :  { %v4462_v36 = vld [vmem:[#allocation2 + $0x40] sm:$0xff]  ;;  %5366 = vst [vmem:[#allocation7_spill] sm:$0xff] %v4613_v41  ;;  %v4624_v54 = vld [vmem:[#allocation2 + $0x89] sm:$0xff]  ;;  %v1817_v55 = vsel %vm4562_vm0, %v4593_v23, 0.0 }
  0xf7   :  { %5336 = vst [vmem:[#allocation3_spill] sm:$0xff] %v4462_v36  ;;  %v4464_v37 = vld [vmem:[#allocation2 + $0xa0] sm:$0xff]  ;;  %3699 = vmatmul.mubr.msk.f32.gmra.mrb[14].mxu1 %vm248_vm4, %v4462_v36  ;;  %v4732_v36 = vld [vmem:[#allocation2 + $0x71] sm:$0xff] }
  0xf8   :  { %5337 = vst [vmem:[#allocation4_spill] sm:$0xff] %v4464_v37  ;;  %3861 = vmatmul.mubr.msk.f32.gmra.mrb[14].mxu0 %vm248_vm4, %v4464_v37  ;;  %3707 = vmatprep.mubr.msk.f32.mxu1 %vm248_vm4, %v402_v32  ;;  %v4595_v26 = vld [vmem:[#allocation2 + $0x3f] sm:$0xff]  ;;  %v407_v32 = vsel %vm4546_vm14, %v4550_v4, 0.0  ;;  %v701_v37 = vsel %vm4552_vm15, %v4613_v41, 0.0 }
  0xf9   :  { %3869 = vmatprep.mubr.msk.f32.mxu0 %vm248_vm4, %v1811_v33  ;;  %v4599_v29 = vld [vmem:[#allocation2 + $0x19] sm:$0xff]  ;;  %v4615_v44 = vld [vmem:[#allocation2 + $0x81] sm:$0xff]  ;;  %v5401_v43 = vsel %vm4546_vm14, %v4595_v26, 0.0 }
  0xfa   :  { %v4601_v30 = vld [vmem:[#allocation2 + $0x79] sm:$0xff] }
  0xfb   :  { %3708 = vmatmul.mubr.msk.f32.vlgmr.msra.gmra.mrb[8].mxu1 %vm248_vm4, %v403_v50  ;;  %v4611_v33 = vld [vmem:[#allocation2 + $0x9f] sm:$0xff] }
  0xfc   :  { %3870 = vmatmul.mubr.msk.f32.vlgmr.msra.gmra.mrb[8].mxu0 %vm248_vm4, %v1812_v51  ;;  %4028 = vmatpush3.bf16.msra.mxu1 %v4403_v13  ;;  %v4622_v51 = vld [vmem:[#allocation2 + $0x29] sm:$0xff]  ;;  %v4678_v50 = vld [vmem:[#allocation2 + $0xa1] sm:$0xff]  ;;  %v5402_v60 = vsel %vm4546_vm14, %v4611_v33, 0.0 }
  0xfd   :  { %4064 = vmatpush3.bf16.msra.mxu0 %v4403_v13  ;;  %3710 = vmatprep.mubr.msk.f32.mxu1 %vm248_vm4, %v404_v0  ;;  %v5360_v13 = vmov 0  ;;  %v4666_v0 = vld [vmem:[#allocation2 + $0x99] sm:$0xff] }
  0xfe   :  { %3872 = vmatprep.mubr.msk.f32.mxu0 %vm248_vm4, %v1813_v1  ;;  %v5361_v13 = vsel %vm4570_vm1, 4294967295, %v5360_v13  ;;  %3723 = vmatprep.subr.msk.mxu1 %vm5322_vm5, %v3246_v47  ;;  %v4664_v1 = vld [vmem:[#allocation2 + $0x39] sm:$0xff] }
  0xff   :  { %3885 = vmatprep.subr.msk.mxu0 %vm5322_vm5, %v3351_v52  ;;  %3711 = vmatmul.mubr.msk.f32.gmra.mrb[10].mxu1 %vm248_vm4, %v405_v18  ;;  %v4668_v18 = vld [vmem:[#allocation2 + $0x41] sm:$0xff] }
 0x100   :  { %3873 = vmatmul.mubr.msk.f32.gmra.mrb[10].mxu0 %vm248_vm4, %v1814_v19  ;;  %3713 = vmatprep.mubr.msk.f32.mxu1 %vm248_vm4, %v406_v20  ;;  %v4640_v19 = vld [vmem:[#allocation2 + $0x31] sm:$0xff] }
 0x101   :  { %3875 = vmatprep.mubr.msk.f32.mxu0 %vm248_vm4, %v1815_v31  ;;  %3724 = vmatpush3.msk.msra.mxu1 %vm5322_vm5, %v3246_v47  ;;  %v4642_v20 = vld [vmem:[#allocation2 + $0x91] sm:$0xff]  ;;  %v408_v31 = vsel %vm4562_vm0, %v4566_v10, 0.0  ;;  %v2097_v47 = vld [vmem:[#allocation2 + $0x69] sm:$0xff] }
 0x102   :  { %3886 = vmatpush3.msk.msra.mxu0 %vm5322_vm5, %v3351_v52  ;;  %v1816_v52 = vsel %vm4546_vm14, %v4558_v6, 0.0  ;;  %4030 = vmatprep.subr.bf16.mxu1 %v4597_v27  ;;  %v2105_v48 = vsel %vm4506_vm10, %v2097_v47, 0.0  ;;  %v3258_v47 = vld [vmem:[%s5310_s2 + $0x58] sm:$0xf] }
 0x103   :  { %4066 = vmatprep.subr.bf16.mxu0 %v4597_v27  ;;  %3714 = vmatmul.mubr.msk.f32.gmra.mrb[12].mxu1 %vm248_vm4, %v407_v32  ;;  %v4730_v32 = vld [vmem:[#allocation2 + $0x11] sm:$0xff] }
 0x104   :  { %3876 = vmatmul.mubr.msk.f32.gmra.mrb[12].mxu0 %vm248_vm4, %v1816_v52  ;;  %3716 = vmatprep.mubr.msk.f32.mxu1 %vm248_vm4, %v408_v31  ;;  %v690_v52 = vld [vmem:[#allocation2 + $0x9] sm:$0xff]  ;;  %v409_v31 = vsel %vm4570_vm1, %v4595_v26, 0.0 }
 0x105   :  { %3878 = vmatprep.mubr.msk.f32.mxu0 %vm248_vm4, %v1817_v55  ;;  %v1818_v55 = vsel %vm4570_vm1, %v4611_v33, 0.0  ;;  %v698_v49 = vsel %vm4506_vm10, %v690_v52, 0.0  ;;  %v3269_v52 = vld [vmem:[%s5310_s2 + $0x68] sm:$0xff] }
 0x107   :  { %3717 = vmatmul.mubr.msk.f32.gmra.mrb[14].mxu1 %vm248_vm4, %v409_v31  ;;  %v699_v31 = vsel %vm4528_vm12, %v4730_v32, 0.0 }
 0x108   :  { %3879 = vmatmul.mubr.msk.f32.gmra.mrb[14].mxu0 %vm248_vm4, %v1818_v55  ;;  %3725 = vmatprep.mubr.msk.f32.mxu1 %vm248_vm4, %v698_v49  ;;  %v2106_v55 = vsel %vm4528_vm12, %v4732_v36, 0.0  ;;  %v3268_v49 = vld [vmem:[%s5310_s2 + $0x60] sm:$0xff] }
 0x109   :  { %3887 = vmatprep.mubr.msk.f32.mxu0 %vm248_vm4, %v2105_v48  ;;  %v3363_v48 = vld [vmem:[%s5310_s2 + $0x58] sm:$0xf]  ;;  %v4033_v62 = vpack.c.bf16 %v3269_v52, %v3268_v49  ;;  %v2110_v52 = vsel %vm4578_vm3, %v4642_v20, 0.0 }
 0x10b   :  { %3726 = vmatmul.mubr.msk.f32.vlgmr.msra.gmra.mrb[8].mxu1 %vm248_vm4, %v699_v31  ;;  %v700_v31 = vsel %vm4532_vm13, %v4599_v29, 0.0 }
 0x10c   :  { %3888 = vmatmul.mubr.msk.f32.vlgmr.msra.gmra.mrb[8].mxu0 %vm248_vm4, %v2106_v55  ;;  %4032 = vmatpush3.bf16.msra.mxu1 %v4597_v27  ;;  %v2107_v55 = vsel %vm4532_vm13, %v4601_v30, 0.0 }
 0x10d   :  { %4068 = vmatpush3.bf16.msra.mxu0 %v4597_v27  ;;  %3728 = vmatprep.mubr.msk.f32.mxu1 %vm248_vm4, %v700_v31  ;;  %v2108_v27 = vsel %vm4552_vm15, %v4615_v44, 0.0  ;;  %v702_v31 = vsel %vm4574_vm2, %v4622_v51, 0.0  ;;  %vm5370_vm15 = vcmask 1043456  }
 0x10e   :  { %3890 = vmatprep.mubr.msk.f32.mxu0 %vm248_vm4, %v2107_v55  ;;  %3741 = vmatprep.subr.msk.mxu1 %vm5322_vm5, %v3258_v47  ;;  %v2109_v55 = vsel %vm4574_vm2, %v4624_v54, 0.0  ;;  %vm5371_vm13 = vmmov %vm5370_vm15 }
 0x10f   :  { %3903 = vmatprep.subr.msk.mxu0 %vm5322_vm5, %v3363_v48  ;;  %3729 = vmatmul.mubr.msk.f32.gmra.mrb[10].mxu1 %vm248_vm4, %v701_v37  ;;  %vm4786_vm5 = vcmp.lt.s32.totalorder %v5367_v5, 7  ;;  %v703_v37 = vsel %vm4578_vm3, %v4640_v19, 0.0 }
 0x110   :  { %3891 = vmatmul.mubr.msk.f32.gmra.mrb[10].mxu0 %vm248_vm4, %v2108_v27  ;;  %3731 = vmatprep.mubr.msk.f32.mxu1 %vm248_vm4, %v702_v31  ;;  %v704_v34 = vsel %vm4786_vm5, %v4664_v1, 0.0  ;;  %v2111_v5 = vsel %vm4786_vm5, %v4666_v0, 0.0 }
 0x111   :  { %3893 = vmatprep.mubr.msk.f32.mxu0 %vm248_vm4, %v2109_v55  ;;  %3742 = vmatpush3.msk.msra.mxu1 %vm5370_vm15, %v3258_v47  ;;  %v5372_v47 = vand.u32 7, %v4460_v35  ;;  %v858_v35 = vsel %vm4446_vm6, %v4474_v39, 0.0  ;;  %v2264_v55 = vsel %vm4446_vm6, %v4476_v40, 0.0  ;;  %v3270_v39 = vld [vmem:[%s5310_s2 + $0x70] sm:$0xf] }
 0x112   :  { %3904 = vmatpush3.msk.msra.mxu0 %vm5371_vm13, %v3363_v48  ;;  %4034 = vmatprep.subr.bf16.mxu1 %v4033_v62  ;;  %v3375_v40 = vld [vmem:[%s5310_s2 + $0x70] sm:$0xf] }
 0x113   :  { %4070 = vmatprep.subr.bf16.mxu0 %v4033_v62  ;;  %3732 = vmatmul.mubr.msk.f32.gmra.mrb[12].mxu1 %vm248_vm4, %v703_v37  ;;  %vm4808_vm13 = vcmp.lt.s32.totalorder %v5372_v47, 7  ;;  %v859_v37 = vsel %vm4470_vm7, %v4488_v45, 0.0  ;;  %v860_v47 = vsel %vm4480_vm8, %v4518_v56, 0.0 }
 0x114   :  { %3894 = vmatmul.mubr.msk.f32.gmra.mrb[12].mxu0 %vm248_vm4, %v2110_v52  ;;  %3734 = vmatprep.mubr.msk.f32.mxu1 %vm248_vm4, %v704_v34  ;;  %v705_v27 = vsel %vm4808_vm13, %v4668_v18, 0.0  ;;  %v2112_v31 = vsel %vm4808_vm13, %v4678_v50, 0.0  ;;  %v2265_v52 = vsel %vm4470_vm7, %v4490_v46, 0.0  ;;  %v3280_v34 = vld [vmem:[%s5310_s2 + $0x78] sm:$0xff]  ;;  %vm5375_vm7 = vmmov %vm5370_vm15 }
 0x115   :  { %3896 = vmatprep.mubr.msk.f32.mxu0 %vm248_vm4, %v2111_v5  ;;  %v3281_v5 = vld [vmem:[%s5310_s2 + $0x80] sm:$0xff] }
 0x117   :  { %3735 = vmatmul.mubr.msk.f32.gmra.mrb[14].mxu1 %vm248_vm4, %v705_v27  ;;  %v2266_v27 = vsel %vm4480_vm8, %v4520_v57, 0.0 }
 0x118   :  { %3897 = vmatmul.mubr.msk.f32.gmra.mrb[14].mxu0 %vm248_vm4, %v2112_v31  ;;  %3743 = vmatprep.mubr.msk.f32.mxu1 %vm248_vm4, %v858_v35  ;;  %v861_v31 = vsel %vm4484_vm9, %v4526_v61, 0.0  ;;  %v4037_v35 = vpack.c.bf16 %v3281_v5, %v3280_v34  ;;  %v2269_v34 = vsel %vm4546_vm14, %v4593_v23, 0.0  ;;  %v4892_v5 = vld [vmem:[#allocation2 + $0x47] sm:$0xff] }
 0x119   :  { %3905 = vmatprep.mubr.msk.f32.mxu0 %vm248_vm4, %v2264_v55  ;;  %v862_v55 = vsel %vm4522_vm11, %v4550_v4, 0.0 }
 0x11b   :  { %3744 = vmatmul.mubr.msk.f32.vlgmr.msra.gmra.mrb[8].mxu1 %vm248_vm4, %v859_v37  ;;  %v2268_v37 = vsel %vm4522_vm11, %v4558_v6, 0.0 }
 0x11c   :  { %3906 = vmatmul.mubr.msk.f32.vlgmr.msra.gmra.mrb[8].mxu0 %vm248_vm4, %v2265_v52  ;;  %4036 = vmatpush3.bf16.msra.mxu1 %v4033_v62  ;;  %v863_v52 = vsel %vm4546_vm14, %v4566_v10, 0.0  ;;  %v1329_v10 = vld [vmem:[#allocation2 + $0x4f] sm:$0xff] }
 0x11d   :  { %4072 = vmatpush3.bf16.msra.mxu0 %v4033_v62  ;;  %3746 = vmatprep.mubr.msk.f32.mxu1 %vm248_vm4, %v860_v47  ;;  %v2267_v62 = vsel %vm4484_vm9, %v4544_v2, 0.0  ;;  %v4894_v47 = vld [vmem:[#allocation2 + $0xa7] sm:$0xff] }
 0x11e   :  { %3908 = vmatprep.mubr.msk.f32.mxu0 %vm248_vm4, %v2266_v27  ;;  %3759 = vmatprep.subr.msk.mxu1 %vm5370_vm15, %v3270_v39  ;;  %vm5376_vm15 = vmmov %vm5375_vm7  ;;  %v865_v27 = vsel %vm4570_vm1, %v4892_v5, 0.0 }
 0x11f   :  { %3921 = vmatprep.subr.msk.mxu0 %vm5375_vm7, %v3375_v40  ;;  %3747 = vmatmul.mubr.msk.f32.gmra.mrb[10].mxu1 %vm248_vm4, %v861_v31  ;;  %v2271_v31 = vsel %vm4570_vm1, %v4894_v47, 0.0  ;;  %vm5378_vm1 = vmmov %vm5375_vm7 }
 0x120   :  { %3909 = vmatmul.mubr.msk.f32.gmra.mrb[10].mxu0 %vm248_vm4, %v2267_v62  ;;  %3749 = vmatprep.mubr.msk.f32.mxu1 %vm248_vm4, %v862_v55  ;;  %v3282_v62 = vld [vmem:[%s5310_s2 + $0x88] sm:$0xf] }
 0x121   :  { %3911 = vmatprep.mubr.msk.f32.mxu0 %vm248_vm4, %v2268_v37  ;;  %3760 = vmatpush3.msk.msra.mxu1 %vm5376_vm15, %v3270_v39  ;;  %v864_v39 = vsel %vm4562_vm0, %v4595_v26, 0.0  ;;  %v3387_v55 = vld [vmem:[%s5310_s2 + $0x88] sm:$0xf]  ;;  %vm5377_vm15 = vmmov %vm5375_vm7 }
 0x122   :  { %3922 = vmatpush3.msk.msra.mxu0 %vm5375_vm7, %v3375_v40  ;;  %4038 = vmatprep.subr.bf16.mxu1 %v4037_v35  ;;  %v2270_v40 = vsel %vm4562_vm0, %v4611_v33, 0.0  ;;  %vm5379_vm0 = vmmov %vm5378_vm1  ;;  %v3042_v33 = vld [vmem:[#allocation2 + $0xb1] sm:$0xff] }
 0x123   :  { %4074 = vmatprep.subr.bf16.mxu0 %v4037_v35  ;;  %3750 = vmatmul.mubr.msk.f32.gmra.mrb[12].mxu1 %vm248_vm4, %v863_v52  ;;  %v5381_v52 = vld [vmem:[#allocation4_spill] sm:$0xff]  ;;  %v3050_v17 = vsel %vm4808_vm13, %v3042_v33, 0.0 }
 0x124   :  { %3912 = vmatmul.mubr.msk.f32.gmra.mrb[12].mxu0 %vm248_vm4, %v2269_v34  ;;  %3752 = vmatprep.mubr.msk.f32.mxu1 %vm248_vm4, %v864_v39  ;;  %v4950_v34 = vld [vmem:[#allocation2 + $0x48] sm:$0xff] }
 0x125   :  { %3914 = vmatprep.mubr.msk.f32.mxu0 %vm248_vm4, %v2270_v40  ;;  %v4952_v39 = vld [vmem:[#allocation2 + $0xa8] sm:$0xff]  ;;  %v1170_v40 = vsel %vm4506_vm10, %v4730_v32, 0.0  ;;  %v3294_v32 = vld [vmem:[%s5310_s2 + $0xa0] sm:$0xf] }
 0x127   :  { %3753 = vmatmul.mubr.msk.f32.gmra.mrb[14].mxu1 %vm248_vm4, %v865_v27  ;;  %v2574_v27 = vsel %vm4506_vm10, %v4732_v36, 0.0  ;;  %v3399_v36 = vld [vmem:[%s5310_s2 + $0xa0] sm:$0xf] }
 0x128   :  { %3915 = vmatmul.mubr.msk.f32.gmra.mrb[14].mxu0 %vm248_vm4, %v2271_v31  ;;  %3761 = vmatprep.mubr.msk.f32.mxu1 %vm248_vm4, %v4363_v58  ;;  %v3292_v58 = vld [vmem:[%s5310_s2 + $0x90] sm:$0xff] }
 0x129   :  { %3923 = vmatprep.mubr.msk.f32.mxu0 %vm248_vm4, %v4365_v59  ;;  %v3293_v59 = vld [vmem:[%s5310_s2 + $0x98] sm:$0xff] }
 0x12a   :  { %v4041_v37 = vpack.c.bf16 %v3293_v59, %v3292_v58  ;;  %v3304_v58 = vld [vmem:[%s5310_s2 + $0xa8] sm:$0xff]  ;;  %v3305_v59 = vld [vmem:[%s5310_s2 + $0xb0] sm:$0xff] }
 0x12b   :  { %3762 = vmatmul.mubr.msk.f32.vlgmr.msra.gmra.mrb[8].mxu1 %vm248_vm4, %v4387_v7 }
 0x12c   :  { %3924 = vmatmul.mubr.msk.f32.vlgmr.msra.gmra.mrb[8].mxu0 %vm248_vm4, %v4389_v8  ;;  %4040 = vmatpush3.bf16.msra.mxu1 %v4037_v35 }
 0x12d   :  { %4076 = vmatpush3.bf16.msra.mxu0 %v4037_v35  ;;  %3764 = vmatprep.mubr.msk.f32.mxu1 %vm248_vm4, %v4397_v11  ;;  %v5380_v35 = vld [vmem:[#allocation3_spill] sm:$0xff] }
 0x12e   :  { %3926 = vmatprep.mubr.msk.f32.mxu0 %vm248_vm4, %v4399_v12  ;;  %3777 = vmatprep.subr.msk.mxu1 %vm5377_vm15, %v3282_v62  ;;  %vm5386_vm15 = vmmov %vm5375_vm7 }
 0x12f   :  { %3939 = vmatprep.subr.msk.mxu0 %vm5375_vm7, %v3387_v55  ;;  %3765 = vmatmul.mubr.msk.f32.gmra.mrb[10].mxu1 %vm248_vm4, %v4411_v14 }
 0x130   :  { %3927 = vmatmul.mubr.msk.f32.gmra.mrb[10].mxu0 %vm248_vm4, %v4413_v15  ;;  %3767 = vmatprep.mubr.msk.f32.mxu1 %vm248_vm4, %v4427_v21 }
 0x131   :  { %3929 = vmatprep.mubr.msk.f32.mxu0 %vm248_vm4, %v4429_v22  ;;  %3778 = vmatpush3.msk.msra.mxu1 %vm5378_vm1, %v3282_v62  ;;  %v1171_v62 = vsel %vm4528_vm12, %v4599_v29, 0.0 }
 0x132   :  { %3940 = vmatpush3.msk.msra.mxu0 %vm5379_vm0, %v3387_v55  ;;  %4042 = vmatprep.subr.bf16.mxu1 %v4041_v37  ;;  %v2575_v55 = vsel %vm4528_vm12, %v4601_v30, 0.0  ;;  %vm5383_vm0 = vnez %v5352_v63  ;;  %v5417_v63 = vsel %vm4574_vm2, %v4664_v1, 0.0 }
 0x133   :  { %4078 = vmatprep.subr.bf16.mxu0 %v4041_v37  ;;  %3768 = vmatmul.mubr.msk.f32.gmra.mrb[12].mxu1 %vm248_vm4, %v4437_v24 }
 0x134   :  { %3930 = vmatmul.mubr.msk.f32.gmra.mrb[12].mxu0 %vm248_vm4, %v4439_v25  ;;  %3770 = vmatprep.mubr.msk.f32.mxu1 %vm248_vm4, %v5380_v35 }
 0x135   :  { %3932 = vmatprep.mubr.msk.f32.mxu0 %vm248_vm4, %v5381_v52 }
 0x137   :  { %3771 = vmatmul.mubr.msk.f32.gmra.mrb[14].mxu1 %vm248_vm4, %v4950_v34 }
 0x138   :  { %3933 = vmatmul.mubr.msk.f32.gmra.mrb[14].mxu0 %vm248_vm4, %v4952_v39  ;;  %3779 = vmatprep.mubr.msk.f32.mxu1 %vm248_vm4, %v1170_v40  ;;  %v1172_v40 = vsel %vm5383_vm0, %v4613_v41, 0.0  ;;  %v4045_v41 = vpack.c.bf16 %v3305_v59, %v3304_v58  ;;  %v1175_v58 = vsel %vm4578_vm3, %v4664_v1, 0.0  ;;  %v2579_v59 = vsel %vm4578_vm3, %v4666_v0, 0.0 }
 0x139   :  { %3941 = vmatprep.mubr.msk.f32.mxu0 %vm248_vm4, %v2574_v27  ;;  %v2576_v27 = vsel %vm5383_vm0, %v4615_v44, 0.0 }
 0x13b   :  { %3780 = vmatmul.mubr.msk.f32.vlgmr.msra.gmra.mrb[8].mxu1 %vm248_vm4, %v1171_v62  ;;  %v5384_v62 = vld [vmem:[#allocation6_spill] sm:$0xff] }
 0x13c   :  { %3942 = vmatmul.mubr.msk.f32.vlgmr.msra.gmra.mrb[8].mxu0 %vm248_vm4, %v2575_v55  ;;  %4044 = vmatpush3.bf16.msra.mxu1 %v4041_v37  ;;  %vm5385_vm1 = vnez %v5384_v62 }
 0x13d   :  { %4080 = vmatpush3.bf16.msra.mxu0 %v4041_v37  ;;  %3782 = vmatprep.mubr.msk.f32.mxu1 %vm248_vm4, %v1172_v40  ;;  %v1173_v55 = vsel %vm5385_vm1, %v4622_v51, 0.0  ;;  %v2577_v37 = vsel %vm5385_vm1, %v4624_v54, 0.0  ;;  %v1174_v40 = vsel %vm4574_vm2, %v4640_v19, 0.0  ;;  %v5416_v53 = vsel %vm5385_vm1, %v4642_v20, 0.0 }
 0x13e   :  { %3944 = vmatprep.mubr.msk.f32.mxu0 %vm248_vm4, %v2576_v27  ;;  %3795 = vmatprep.subr.msk.mxu1 %vm5386_vm15, %v3294_v32  ;;  %v2578_v27 = vsel %vm4574_vm2, %v4642_v20, 0.0  ;;  %vm5387_vm15 = vmmov %vm5375_vm7 }
 0x13f   :  { %3957 = vmatprep.subr.msk.mxu0 %vm5375_vm7, %v3399_v36  ;;  %3783 = vmatmul.mubr.msk.f32.gmra.mrb[10].mxu1 %vm248_vm4, %v1173_v55  ;;  %v5028_v55 = vld [vmem:[#allocation2 + $0x49] sm:$0xff] }
 0x140   :  { %3945 = vmatmul.mubr.msk.f32.gmra.mrb[10].mxu0 %vm248_vm4, %v2577_v37  ;;  %3785 = vmatprep.mubr.msk.f32.mxu1 %vm248_vm4, %v1174_v40  ;;  %v5030_v37 = vld [vmem:[#allocation2 + $0xa9] sm:$0xff]  ;;  %v1177_v40 = vsel %vm4808_vm13, %v5028_v55, 0.0  ;;  %v1648_v16 = vsel %vm4786_vm5, %v5028_v55, 0.0 }
 0x141   :  { %3947 = vmatprep.mubr.msk.f32.mxu0 %vm248_vm4, %v2578_v27  ;;  %3796 = vmatpush3.msk.msra.mxu1 %vm5387_vm15, %v3294_v32  ;;  %v1176_v32 = vsel %vm4786_vm5, %v4668_v18, 0.0  ;;  %v2581_v27 = vsel %vm4808_vm13, %v5030_v37, 0.0  ;;  %vm5388_vm15 = vnez %v5339_v38  ;;  %v5391_v38 = vsel %vm4480_vm8, %v4526_v61, 0.0 }
 0x142   :  { %3958 = vmatpush3.msk.msra.mxu0 %vm5375_vm7, %v3399_v36  ;;  %4046 = vmatprep.subr.bf16.mxu1 %v4045_v41  ;;  %v2580_v36 = vsel %vm4786_vm5, %v4678_v50, 0.0  ;;  %v5396_v61 = vsel %vm4484_vm9, %v4558_v6, 0.0 }
 0x143   :  { %4082 = vmatprep.subr.bf16.mxu0 %v4045_v41  ;;  %3786 = vmatmul.mubr.msk.f32.gmra.mrb[12].mxu1 %vm248_vm4, %v1175_v58  ;;  %v1330_v58 = vsel %vm4446_vm6, %v4488_v45, 0.0  ;;  %v5390_v45 = vsel %vm5388_vm15, %v4520_v57, 0.0  ;;  %v5392_v57 = vsel %vm4480_vm8, %v4544_v2, 0.0  ;;  %v5398_v2 = vsel %vm4522_vm11, %v4593_v23, 0.0  ;;  %v2732_v23 = vld [vmem:[#allocation2 + $0xaf] sm:$0xff] }
 0x144   :  { %3948 = vmatmul.mubr.msk.f32.gmra.mrb[12].mxu0 %vm248_vm4, %v2579_v59  ;;  %3788 = vmatprep.mubr.msk.f32.mxu1 %vm248_vm4, %v1176_v32  ;;  %v2733_v59 = vsel %vm4446_vm6, %v4490_v46, 0.0  ;;  %v3306_v32 = vld [vmem:[%s5310_s2 + $0xb8] sm:$0xf]  ;;  %v3316_v46 = vld [vmem:[%s5310_s2 + $0xc0] sm:$0xff]  ;;  %vm5393_vm6 = vmmov %vm5375_vm7  ;;  %vm5404_vm11 = vnez %v5361_v13 }
 0x145   :  { %3950 = vmatprep.mubr.msk.f32.mxu0 %vm248_vm4, %v2580_v36  ;;  %v5389_v36 = vsel %vm5388_vm15, %v4518_v56, 0.0  ;;  %v3317_v56 = vld [vmem:[%s5310_s2 + $0xc8] sm:$0xff]  ;;  %vm5394_vm7 = vmmov %vm5393_vm6  ;;  %v1337_v3 = vsel %vm5404_vm11, %v1329_v10, 0.0  ;;  %v2740_v26 = vsel %vm5404_vm11, %v2732_v23, 0.0  ;;  %v3423_v13 = vld [vmem:[%s5310_s2 + $0xd0] sm:$0xf] }
 0x146   :  { %vm5399_vm8 = vmmov %vm5393_vm6 }
 0x147   :  { %3789 = vmatmul.mubr.msk.f32.gmra.mrb[14].mxu1 %vm248_vm4, %v1177_v40  ;;  %v4049_v40 = vpack.c.bf16 %v3317_v56, %v3316_v46  ;;  %vm5400_vm15 = vmmov %vm5393_vm6 }
 0x148   :  { %3951 = vmatmul.mubr.msk.f32.gmra.mrb[14].mxu0 %vm248_vm4, %v2581_v27  ;;  %3797 = vmatprep.mubr.msk.f32.mxu1 %vm248_vm4, %v1330_v58  ;;  %vm5405_vm14 = vmmov %vm5393_vm6 }
 0x149   :  { %3959 = vmatprep.mubr.msk.f32.mxu0 %vm248_vm4, %v2733_v59 }
 0x14b   :  { %3798 = vmatmul.mubr.msk.f32.vlgmr.msra.gmra.mrb[8].mxu1 %vm248_vm4, %v5389_v36 }
 0x14c   :  { %3960 = vmatmul.mubr.msk.f32.vlgmr.msra.gmra.mrb[8].mxu0 %vm248_vm4, %v5390_v45  ;;  %4048 = vmatpush3.bf16.msra.mxu1 %v4045_v41 }
 0x14d   :  { %4084 = vmatpush3.bf16.msra.mxu0 %v4045_v41  ;;  %3800 = vmatprep.mubr.msk.f32.mxu1 %vm248_vm4, %v5391_v38  ;;  %v5395_v41 = vsel %vm4484_vm9, %v4550_v4, 0.0  ;;  %vm5403_vm9 = vnez %v5359_v9  ;;  %v3318_v9 = vld [vmem:[%s5310_s2 + $0xd0] sm:$0xf] }
 0x14e   :  { %3962 = vmatprep.mubr.msk.f32.mxu0 %vm248_vm4, %v5392_v57  ;;  %3813 = vmatprep.subr.msk.mxu1 %vm5393_vm6, %v3306_v32  ;;  %v1336_v4 = vsel %vm5403_vm9, %v4892_v5, 0.0  ;;  %v2739_v6 = vsel %vm5403_vm9, %v4894_v47, 0.0 }
 0x14f   :  { %3975 = vmatprep.subr.msk.mxu0 %vm5394_vm7, %v3411_v28  ;;  %3801 = vmatmul.mubr.msk.f32.gmra.mrb[10].mxu1 %vm248_vm4, %v5395_v41  ;;  %vm5406_vm7 = vmmov %vm5393_vm6 }
 0x150   :  { %3963 = vmatmul.mubr.msk.f32.gmra.mrb[10].mxu0 %vm248_vm4, %v5396_v61  ;;  %3803 = vmatprep.mubr.msk.f32.mxu1 %vm248_vm4, %v5397_v42 }
 0x151   :  { %3965 = vmatprep.mubr.msk.f32.mxu0 %vm248_vm4, %v5398_v2  ;;  %3814 = vmatpush3.msk.msra.mxu1 %vm5399_vm8, %v3306_v32  ;;  %vm5407_vm8 = vmmov %vm5393_vm6 }
 0x152   :  { %3976 = vmatpush3.msk.msra.mxu0 %vm5400_vm15, %v3411_v28  ;;  %4050 = vmatprep.subr.bf16.mxu1 %v4049_v40 }
 0x153   :  { %4086 = vmatprep.subr.bf16.mxu0 %v4049_v40  ;;  %3804 = vmatmul.mubr.msk.f32.gmra.mrb[12].mxu1 %vm248_vm4, %v5401_v43 }
 0x154   :  { %3966 = vmatmul.mubr.msk.f32.gmra.mrb[12].mxu0 %vm248_vm4, %v5402_v60  ;;  %3806 = vmatprep.mubr.msk.f32.mxu1 %vm248_vm4, %v1336_v4 }
 0x155   :  { %3968 = vmatprep.mubr.msk.f32.mxu0 %vm248_vm4, %v2739_v6 }
 0x157   :  { %3807 = vmatmul.mubr.msk.f32.gmra.mrb[14].mxu1 %vm248_vm4, %v1337_v3 }
 0x158   :  { %3969 = vmatmul.mubr.msk.f32.gmra.mrb[14].mxu0 %vm248_vm4, %v2740_v26  ;;  %3815 = vmatprep.mubr.msk.f32.mxu1 %vm248_vm4, %v4387_v7  ;;  %v1489_v7 = vld [vmem:[#allocation2 + $0x50] sm:$0xff] }
 0x159   :  { %3977 = vmatprep.mubr.msk.f32.mxu0 %vm248_vm4, %v4389_v8  ;;  %v2891_v8 = vld [vmem:[#allocation2 + $0xb0] sm:$0xff] }
 0x15b   :  { %3816 = vmatmul.mubr.msk.f32.vlgmr.msra.gmra.mrb[8].mxu1 %vm248_vm4, %v4397_v11  ;;  %v5408_v11 = vsel %vm4506_vm10, %v4599_v29, 0.0  ;;  %v5418_v29 = vsel %vm4574_vm2, %v4666_v0, 0.0 }
 0x15c   :  { %3978 = vmatmul.mubr.msk.f32.vlgmr.msra.gmra.mrb[8].mxu0 %vm248_vm4, %v4399_v12  ;;  %4052 = vmatpush3.bf16.msra.mxu1 %v4049_v40  ;;  %v5409_v12 = vsel %vm4506_vm10, %v4601_v30, 0.0  ;;  %v1641_v30 = vld [vmem:[#allocation2 + $0x51] sm:$0xff]  ;;  %vm1794_vm10 = vcmask 23552  }
 0x15d   :  { %4088 = vmatpush3.bf16.msra.mxu0 %v4049_v40  ;;  %3818 = vmatprep.mubr.msk.f32.mxu1 %vm248_vm4, %v4411_v14  ;;  %v5410_v14 = vld [vmem:[#allocation7_spill] sm:$0xff]  ;;  %v1649_v0 = vsel %vm4808_vm13, %v1641_v30, 0.0 }
 0x15e   :  { %3980 = vmatprep.mubr.msk.f32.mxu0 %vm248_vm4, %v4413_v15  ;;  %3831 = vmatprep.subr.msk.mxu1 %vm5405_vm14, %v3318_v9  ;;  %v5411_v15 = vsel %vm4528_vm12, %v5410_v14, 0.0 }
 0x15f   :  { %3993 = vmatprep.subr.msk.mxu0 %vm5393_vm6, %v3423_v13  ;;  %3819 = vmatmul.mubr.msk.f32.gmra.mrb[10].mxu1 %vm248_vm4, %v4427_v21  ;;  %v5412_v21 = vsel %vm4528_vm12, %v4615_v44, 0.0  ;;  %v5419_v44 = vsel %vm4578_vm3, %v4668_v18, 0.0 }
 0x160   :  { %3981 = vmatmul.mubr.msk.f32.gmra.mrb[10].mxu0 %vm248_vm4, %v4429_v22  ;;  %3821 = vmatprep.mubr.msk.f32.mxu1 %vm248_vm4, %v4437_v24  ;;  %v5413_v22 = vsel %vm5383_vm0, %v4622_v51, 0.0  ;;  %v5414_v24 = vsel %vm5383_vm0, %v4624_v54, 0.0  ;;  %v5420_v51 = vsel %vm4578_vm3, %v4678_v50, 0.0  ;;  %v3049_v54 = vsel %vm4786_vm5, %v5030_v37, 0.0 }
 0x161   :  { %3983 = vmatprep.mubr.msk.f32.mxu0 %vm248_vm4, %v4439_v25  ;;  %3832 = vmatpush3.msk.msra.mxu1 %vm5406_vm7, %v3318_v9  ;;  %v5415_v25 = vsel %vm5385_vm1, %v4640_v19, 0.0 }
 0x162   :  { %3994 = vmatpush3.msk.msra.mxu0 %vm5407_vm8, %v3423_v13 }
 0x163   :  { %3822 = vmatmul.mubr.msk.f32.gmra.mrb[12].mxu1 %vm248_vm4, %v5380_v35 }
 0x164   :  { %3984 = vmatmul.mubr.msk.f32.gmra.mrb[12].mxu0 %vm248_vm4, %v5381_v52  ;;  %3824 = vmatprep.mubr.msk.f32.mxu1 %vm248_vm4, %v4950_v34 }
 0x165   :  { %3986 = vmatprep.mubr.msk.f32.mxu0 %vm248_vm4, %v4952_v39 }
 0x167   :  { %3825 = vmatmul.mubr.msk.f32.gmra.mrb[14].mxu1 %vm248_vm4, %v1489_v7 }
 0x168   :  { %3987 = vmatmul.mubr.msk.f32.gmra.mrb[14].mxu0 %vm248_vm4, %v2891_v8  ;;  %3833 = vmatprep.mubr.msk.f32.mxu1 %vm248_vm4, %v5408_v11 }
 0x169   :  { %3995 = vmatprep.mubr.msk.f32.mxu0 %vm248_vm4, %v5409_v12 }
 0x16b   :  { %3834 = vmatmul.mubr.msk.f32.vlgmr.msra.gmra.mrb[8].mxu1 %vm248_vm4, %v5411_v15 }
 0x16c   :  { %3996 = vmatmul.mubr.msk.f32.vlgmr.msra.gmra.mrb[8].mxu0 %vm248_vm4, %v5412_v21  ;;  %3836 = vmatprep.mubr.msk.f32.mxu1 %vm248_vm4, %v5413_v22 }
 0x16d   :  { %3998 = vmatprep.mubr.msk.f32.mxu0 %vm248_vm4, %v5414_v24 }
 0x16f   :  { %3837 = vmatmul.mubr.msk.f32.gmra.mrb[10].mxu1 %vm248_vm4, %v5415_v25 }
 0x170   :  { %3999 = vmatmul.mubr.msk.f32.gmra.mrb[10].mxu0 %vm248_vm4, %v5416_v53  ;;  %3839 = vmatprep.mubr.msk.f32.mxu1 %vm248_vm4, %v5417_v63 }
 0x171   :  { %4001 = vmatprep.mubr.msk.f32.mxu0 %vm248_vm4, %v5418_v29 }
 0x173   :  { %3840 = vmatmul.mubr.msk.f32.gmra.mrb[12].mxu1 %vm248_vm4, %v5419_v44 }
 0x174   :  { %4002 = vmatmul.mubr.msk.f32.gmra.mrb[12].mxu0 %vm248_vm4, %v5420_v51  ;;  %3842 = vmatprep.mubr.msk.f32.mxu1 %vm248_vm4, %v1648_v16 }
 0x175   :  { %4004 = vmatprep.mubr.msk.f32.mxu0 %vm248_vm4, %v3049_v54 }
 0x177   :  { %3843 = vmatmul.mubr.msk.f32.gmra.mrb[14].mxu1 %vm248_vm4, %v1649_v0 }
 0x178   :  { %4005 = vmatmul.mubr.msk.f32.gmra.mrb[14].mxu0 %vm248_vm4, %v3050_v17 }
 0x23e   :  { %v3835_v50 = vpop.f32.mrb[8].mxu1 }
 0x23f   :  { %v3997_v1 = vpop.f32.mrb[8].mxu0  ;;  %1796 = vst.msk [vmem:[%s5311_s3 + $0x8] sm:$0xff] %vm1794_vm10, %v3835_v50  ;;  %v1747_v18 = vpop.f32.mrb[9].mxu1 }
 0x240   :  { %3195 = vst.msk [vmem:[%s5311_s3 + $0x48] sm:$0xff] %vm1794_vm10, %v3997_v1  ;;  %v3147_v19 = vpop.f32.mrb[9].mxu0  ;;  %1795 = vst.msk [vmem:[%s5311_s3] sm:$0xff] %vm1794_vm10, %v1747_v18 }
 0x241   :  { %3194 = vst.msk [vmem:[%s5311_s3 + $0x40] sm:$0xff] %vm1794_vm10, %v3147_v19 }
 0x242   :  { %v3838_v20 = vpop.f32.mrb[10].mxu1 }
 0x243   :  { %v4000_v49 = vpop.f32.mrb[10].mxu0  ;;  %1798 = vst.msk [vmem:[%s5311_s3 + $0x18] sm:$0xff] %vm1794_vm10, %v3838_v20  ;;  %v1757_v48 = vpop.f32.mrb[11].mxu1 }
 0x244   :  { %3197 = vst.msk [vmem:[%s5311_s3 + $0x58] sm:$0xff] %vm1794_vm10, %v4000_v49  ;;  %v3157_v5 = vpop.f32.mrb[11].mxu0  ;;  %1797 = vst.msk [vmem:[%s5311_s3 + $0x10] sm:$0xff] %vm1794_vm10, %v1757_v48 }
 0x245   :  { %3196 = vst.msk [vmem:[%s5311_s3 + $0x50] sm:$0xff] %vm1794_vm10, %v3157_v5 }
 0x246   :  { %v3841_v47 = vpop.f32.mrb[12].mxu1 }
 0x247   :  { %v4003_v35 = vpop.f32.mrb[12].mxu0  ;;  %1800 = vst.msk [vmem:[%s5311_s3 + $0x28] sm:$0xff] %vm1794_vm10, %v3841_v47  ;;  %v1767_v52 = vpop.f32.mrb[13].mxu1 }
 0x248   :  { %3199 = vst.msk [vmem:[%s5311_s3 + $0x68] sm:$0xff] %vm1794_vm10, %v4003_v35  ;;  %v3167_v34 = vpop.f32.mrb[13].mxu0  ;;  %1799 = vst.msk [vmem:[%s5311_s3 + $0x20] sm:$0xff] %vm1794_vm10, %v1767_v52 }
 0x249   :  { %3198 = vst.msk [vmem:[%s5311_s3 + $0x60] sm:$0xff] %vm1794_vm10, %v3167_v34 }
 0x24a   :  { %v3844_v39 = vpop.f32.mrb[14].mxu1 }
 0x24b   :  { %v4006_v31 = vpop.f32.mrb[14].mxu0  ;;  %1802 = vst.msk [vmem:[%s5311_s3 + $0x38] sm:$0xff] %vm1794_vm10, %v3844_v39  ;;  %v1777_v62 = vpop.f32.mrb[15].mxu1 }
 0x24c   :  { %3201 = vst.msk [vmem:[%s5311_s3 + $0x78] sm:$0xff] %vm1794_vm10, %v4006_v31  ;;  %v3177_v55 = vpop.f32.mrb[15].mxu0  ;;  %1801 = vst.msk [vmem:[%s5311_s3 + $0x30] sm:$0xff] %vm1794_vm10, %v1777_v62 }
 0x24d   :  { %3200 = vst.msk [vmem:[%s5311_s3 + $0x70] sm:$0xff] %vm1794_vm10, %v3177_v55 }

</bundles_post_ra>
